<compile_context>
chip_gen: v5e
topology: v5e:2x2
jax: 0.10.0
libtpu: 0.0.40
codegen_flags: <defaults>
</compile_context>

<pallas_src>
import functools

import jax
import jax.numpy as jnp
from jax import lax
from jax.experimental import pallas as pl
from jax.experimental.pallas import tpu as pltpu


def _silu(v):
    return v * jax.nn.sigmoid(v)


# ----------------------------------------------------------------------------
# Pallas kernel: full FastKAN stack (all layers fused), one batch tile per step
# ----------------------------------------------------------------------------
def fastkan_kernel(*refs, num_layers, num_grids, eps, inv_denom, matmul_dtype):
    x_ref = refs[0]
    o_ref = refs[-1]
    layer_refs = refs[1:-1]      # 6 refs per layer: gamma, beta, grid_row, Ws, Wb, bias

    h = x_ref[...].astype(jnp.float32)
    for l in range(num_layers):
        (gamma_ref, beta_ref, grid_ref,
         ws_ref, wb_ref, b_ref) = layer_refs[6 * l: 6 * (l + 1)]

        # Input LayerNorm (PyTorch nn.LayerNorm default eps=1e-5, biased variance).
        mean = jnp.mean(h, axis=-1, keepdims=True)
        var = jnp.mean(jnp.square(h - mean), axis=-1, keepdims=True)
        hn = (h - mean) * lax.rsqrt(var + eps)
        hn = hn * gamma_ref[...] + beta_ref[...]

        # Lane-dense Gaussian RBF: replicate hn G times along lanes, ONE exp call.
        # Column k*in + i holds feature i evaluated at grid point k (slab-major),
        # matching the host-side reorder of the spline weight.
        hn_rep = jnp.tile(hn, (1, num_grids))                         # [tb, G*in]
        rbf = jnp.exp(-jnp.square((hn_rep - grid_ref[...]) * inv_denom))

        # Spline branch: one MXU contraction against resident [G*in, out] weights
        # (already stored in the MXU operand dtype -> no per-step weight cast).
        spline = jnp.dot(rbf.astype(matmul_dtype), ws_ref[...],
                         preferred_element_type=jnp.float32)
        # Base branch: SiLU on the pre-LN input, small second MXU dot, accumulated
        # directly in f32 (no lane-axis concatenation of activations).
        base = jnp.dot(_silu(h).astype(matmul_dtype), wb_ref[...],
                       preferred_element_type=jnp.float32)
        h = spline + base + b_ref[...]

    o_ref[...] = h.astype(o_ref.dtype)


# ----------------------------------------------------------------------------
# Host-side parameter init (mirrors FastKANLayer shapes / inits)
# ----------------------------------------------------------------------------
def init_fastkan_params(key, layers_hidden, num_grids, spline_scale=0.1):
    params = []
    for in_f, out_f in zip(layers_hidden[:-1], layers_hidden[1:]):
        key, k1, k2, k3 = jax.random.split(key, 4)
        spline_w = spline_scale * jax.random.truncated_normal(
            k1, -2.0, 2.0, (out_f, in_f * num_grids), jnp.float32)
        bound = 1.0 / (in_f ** 0.5)
        base_w = jax.random.uniform(k2, (out_f, in_f), jnp.float32, -bound, bound)
        base_b = jax.random.uniform(k3, (out_f,), jnp.float32, -bound, bound)
        params.append(dict(
            spline_w=spline_w, base_w=base_w, base_b=base_b,
            ln_gamma=jnp.ones((in_f,), jnp.float32),
            ln_beta=jnp.zeros((in_f,), jnp.float32)))
    return params


# ----------------------------------------------------------------------------
# One-time kernel-layout prep (repack + dtype cast + last-layer lane padding)
# ----------------------------------------------------------------------------
def prep_fastkan_params(params, num_grids, *, grid_min=-2.0, grid_max=2.0,
                        matmul_dtype=jnp.bfloat16, lane_pad_last=128):
    step = (grid_max - grid_min) / (num_grids - 1)
    grid_pts = jnp.array([grid_min + k * step for k in range(num_grids)],
                         jnp.float32)
    prepped = []
    n_layers = len(params)
    for li, p in enumerate(params):
        out_f, in_f = p["base_w"].shape
        # PyTorch flattening is column i*G + k; kernel RBF column is k*in + i,
        # so reorder the spline weight to slab-major: [out, in, G] -> [G*in, out].
        ws = p["spline_w"].reshape(out_f, in_f, num_grids)
        ws = jnp.transpose(ws, (2, 1, 0)).reshape(num_grids * in_f, out_f)
        wb = p["base_w"].T                                    # [in, out]
        bias = p["base_b"].reshape(1, out_f)

        # Only the LAST layer's output is lane-padded (padding an intermediate
        # layer would alter the next LayerNorm's statistics).
        out_pad = out_f
        if li == n_layers - 1 and out_f % lane_pad_last != 0:
            out_pad = ((out_f + lane_pad_last - 1) // lane_pad_last) * lane_pad_last
            ws = jnp.pad(ws, ((0, 0), (0, out_pad - out_f)))
            wb = jnp.pad(wb, ((0, 0), (0, out_pad - out_f)))
            bias = jnp.pad(bias, ((0, 0), (0, out_pad - out_f)))

        # grid_row column k*in + i = grid point k (matches jnp.tile layout).
        grid_row = jnp.repeat(grid_pts, in_f).reshape(1, num_grids * in_f)

        prepped.append(dict(
            gamma=p["ln_gamma"].reshape(1, in_f).astype(jnp.float32),
            beta=p["ln_beta"].reshape(1, in_f).astype(jnp.float32),
            grid_row=grid_row,
            w_spline=ws.astype(matmul_dtype),     # stored in MXU operand dtype
            w_base=wb.astype(matmul_dtype),
            bias=bias.astype(jnp.float32),        # added to f32 accumulator
            out_features=out_f,
        ))
    return prepped


def _pick_batch_tile(B, cap=1024, min_grid_steps=1):
    # v7x: pass min_grid_steps=2 so the "parallel" batch axis spans both TCs.
    if min_grid_steps > 1 and B >= 2 * min_grid_steps:
        cap = min(cap, B // min_grid_steps)
    if B <= cap:
        return B
    for cand in range(min(cap, B), 0, -1):
        if B % cand == 0 and (cand % 8 == 0 or cand == B):
            return cand
    return B


# ----------------------------------------------------------------------------
# Forward: one pallas_call for the whole network
# ----------------------------------------------------------------------------
def fastkan_forward(x, prepped, *, grid_min=-2.0, grid_max=2.0, num_grids=8,
                    eps=1e-5, tb=None, min_grid_steps=1):
    B, in0 = x.shape
    assert in0 == prepped[0]["gamma"].shape[1]
    num_layers = len(prepped)
    matmul_dtype = prepped[0]["w_spline"].dtype
    out_pad = prepped[-1]["w_spline"].shape[1]      # lane-dense padded width
    out_last = prepped[-1]["out_features"]          # true model width

    if tb is None:
        tb = _pick_batch_tile(B, min_grid_steps=min_grid_steps)
    assert B % tb == 0

    step = (grid_max - grid_min) / (num_grids - 1)
    inv_denom = float(1.0 / step)

    kernel = functools.partial(
        fastkan_kernel, num_layers=num_layers, num_grids=num_grids,
        eps=eps, inv_denom=inv_denom, matmul_dtype=matmul_dtype)

    # Advisory cost estimate so XLA can schedule around the custom call.
    flops = 0
    transcendentals = 0
    bytes_accessed = int(x.size) * x.dtype.itemsize + B * out_pad * 4
    for p in prepped:
        in_f = p["gamma"].shape[1]
        gi = p["grid_row"].shape[1]
        op = p["w_spline"].shape[1]
        flops += 2 * B * (gi + in_f) * op + 10 * B * in_f
        transcendentals += B * (gi + in_f)          # exp per RBF elem + sigmoid
        bytes_accessed += sum(int(p[k].size) * p[k].dtype.itemsize
                              for k in ("gamma", "beta", "grid_row",
                                        "w_spline", "w_base", "bias"))
    cost = pl.CostEstimate(flops=int(flops), transcendentals=int(transcendentals),
                           bytes_accessed=int(bytes_accessed))

    buffered_cls = getattr(pl, "Buffered", None)

    def run(use_buffered):
        # Constant-index (resident) refs: single-buffer them when supported --
        # their block never changes, so double-buffering is pure VMEM waste.
        const_kwargs = ({"pipeline_mode": buffered_cls(1)}
                        if (use_buffered and buffered_cls is not None) else {})
        in_specs = [pl.BlockSpec((tb, in0), lambda i: (i, 0))]          # x tile
        args = [x]
        for p in prepped:
            for name in ("gamma", "beta", "grid_row", "w_spline", "w_base", "bias"):
                arr = p[name]
                in_specs.append(
                    pl.BlockSpec(arr.shape, lambda i: (0, 0), **const_kwargs))
                args.append(arr)

        return pl.pallas_call(
            kernel,
            out_shape=jax.ShapeDtypeStruct((B, out_pad), jnp.float32),
            grid=(B // tb,),
            in_specs=in_specs,
            out_specs=pl.BlockSpec((tb, out_pad), lambda i: (i, 0)),
            compiler_params=pltpu.CompilerParams(
                dimension_semantics=("parallel",),
                vmem_limit_bytes=48 * 1024 * 1024),
            cost_estimate=cost,
        )(*args)

    try:
        out = run(True)
    except Exception:
        # Fallback if single-buffered pipeline_mode is rejected by this JAX build.
        out = run(False)

    if out_pad != out_last:
        out = out[:, :out_last]
    return out


# ----------------------------------------------------------------------------
# Pure-JAX reference (matches FastKANLayer forward exactly)
# ----------------------------------------------------------------------------
def fastkan_forward_ref(x, params, *, grid_min=-2.0, grid_max=2.0, num_grids=8,
                        eps=1e-5):
    step = (grid_max - grid_min) / (num_grids - 1)
    grid = jnp.array([grid_min + k * step for k in range(num_grids)], jnp.float32)
    inv_denom = 1.0 / step
    for p in params:
        mean = x.mean(-1, keepdims=True)
        var = jnp.square(x - mean).mean(-1, keepdims=True)
        hn = (x - mean) * lax.rsqrt(var + eps) * p["ln_gamma"] + p["ln_beta"]
        rbf = jnp.exp(-jnp.square((hn[..., None] - grid) * inv_denom))  # [B, in, G]
        spline = rbf.reshape(x.shape[0], -1) @ p["spline_w"].T
        base = _silu(x) @ p["base_w"].T + p["base_b"]
        x = spline + base
    return x


if __name__ == "__main__":
    layers_hidden = [16, 32, 8]
    num_grids = 8          # FastKAN default grid_size=8, grid_range=[-2, 2]
    batch = 16

    key = jax.random.PRNGKey(0)
    kx, kp = jax.random.split(key)
    x = jax.random.normal(kx, (batch, layers_hidden[0]), jnp.float32)
    params = init_fastkan_params(kp, layers_hidden, num_grids)

    ref = jax.block_until_ready(fastkan_forward_ref(x, params, num_grids=num_grids))

    # f32-operand MXU path (exactness check).
    prepped_f32 = prep_fastkan_params(params, num_grids, matmul_dtype=jnp.float32)
    out = jax.block_until_ready(fastkan_forward(x, prepped_f32, num_grids=num_grids))
    assert out.shape == (batch, layers_hidden[-1])
    err = float(jnp.max(jnp.abs(out - ref)))
    assert err < 1e-4, f"f32 max abs err {err}"

    # bf16-operand MXU path (native fast path on all generations), f32 accumulate.
    prepped_bf16 = prep_fastkan_params(params, num_grids, matmul_dtype=jnp.bfloat16)
    out_bf16 = jax.block_until_ready(
        fastkan_forward(x, prepped_bf16, num_grids=num_grids))
    err_bf16 = float(jnp.max(jnp.abs(out_bf16 - ref)))
    assert err_bf16 < 5e-2, f"bf16 max abs err {err_bf16}"

    print("KERNEL_OK")
</pallas_src>

<mosaic_0001>
module attributes {stable_mosaic.version = 11 : i64} {
  func.func @fastkan_kernel(%arg0: i32, %arg1: memref<16x16xf32, #tpu.memory_space<vmem>>, %arg2: memref<1x16xf32, #tpu.memory_space<vmem>>, %arg3: memref<1x16xf32, #tpu.memory_space<vmem>>, %arg4: memref<1x128xf32, #tpu.memory_space<vmem>>, %arg5: memref<128x32xf32, #tpu.memory_space<vmem>>, %arg6: memref<16x32xf32, #tpu.memory_space<vmem>>, %arg7: memref<1x32xf32, #tpu.memory_space<vmem>>, %arg8: memref<1x32xf32, #tpu.memory_space<vmem>>, %arg9: memref<1x32xf32, #tpu.memory_space<vmem>>, %arg10: memref<1x256xf32, #tpu.memory_space<vmem>>, %arg11: memref<256x128xf32, #tpu.memory_space<vmem>>, %arg12: memref<32x128xf32, #tpu.memory_space<vmem>>, %arg13: memref<1x128xf32, #tpu.memory_space<vmem>>, %arg14: memref<16x128xf32, #tpu.memory_space<vmem>>) attributes {dimension_semantics = [#tpu.dimension_semantics<parallel>], iteration_bounds = array<i64: 1>, scalar_prefetch = 0 : i64, scratch_operands = 0 : i64, tpu.core_type = #tpu.core_type<tc>, window_params = [{transform_indices = @transform_0, window_bounds = array<i64: 16, 16>}, {pipeline_mode = #tpu.pipeline_mode<synchronous>, transform_indices = @transform_1, window_bounds = array<i64: 1, 16>}, {pipeline_mode = #tpu.pipeline_mode<synchronous>, transform_indices = @transform_2, window_bounds = array<i64: 1, 16>}, {pipeline_mode = #tpu.pipeline_mode<synchronous>, transform_indices = @transform_3, window_bounds = array<i64: 1, 128>}, {pipeline_mode = #tpu.pipeline_mode<synchronous>, transform_indices = @transform_4, window_bounds = array<i64: 128, 32>}, {pipeline_mode = #tpu.pipeline_mode<synchronous>, transform_indices = @transform_5, window_bounds = array<i64: 16, 32>}, {pipeline_mode = #tpu.pipeline_mode<synchronous>, transform_indices = @transform_6, window_bounds = array<i64: 1, 32>}, {pipeline_mode = #tpu.pipeline_mode<synchronous>, transform_indices = @transform_7, window_bounds = array<i64: 1, 32>}, {pipeline_mode = #tpu.pipeline_mode<synchronous>, transform_indices = @transform_8, window_bounds = array<i64: 1, 32>}, {pipeline_mode = #tpu.pipeline_mode<synchronous>, transform_indices = @transform_9, window_bounds = array<i64: 1, 256>}, {pipeline_mode = #tpu.pipeline_mode<synchronous>, transform_indices = @transform_10, window_bounds = array<i64: 256, 128>}, {pipeline_mode = #tpu.pipeline_mode<synchronous>, transform_indices = @transform_11, window_bounds = array<i64: 32, 128>}, {pipeline_mode = #tpu.pipeline_mode<synchronous>, transform_indices = @transform_12, window_bounds = array<i64: 1, 128>}, {transform_indices = @transform_13, window_bounds = array<i64: 16, 128>}]} {
    %c0 = arith.constant 0 : index
    %c0_0 = arith.constant 0 : index
    %0 = vector.load %arg1[%c0, %c0_0] : memref<16x16xf32, #tpu.memory_space<vmem>>, vector<16x16xf32>
    %cst = arith.constant dense<0.000000e+00> : vector<16xf32>
    %1 = vector.multi_reduction <add>, %0, %cst [1] : vector<16x16xf32> to vector<16xf32>
    %2 = vector.shape_cast %1 : vector<16xf32> to vector<16x1xf32>
    %cst_1 = arith.constant 1.600000e+01 : f32
    %3 = vector.broadcast %cst_1 : f32 to vector<16x1xf32>
    %4 = arith.divf %2, %3 : vector<16x1xf32>
    %5 = vector.broadcast %4 : vector<16x1xf32> to vector<16x16xf32>
    %6 = arith.subf %0, %5 : vector<16x16xf32>
    %7 = arith.mulf %6, %6 : vector<16x16xf32>
    %cst_2 = arith.constant dense<0.000000e+00> : vector<16xf32>
    %8 = vector.multi_reduction <add>, %7, %cst_2 [1] : vector<16x16xf32> to vector<16xf32>
    %9 = vector.shape_cast %8 : vector<16xf32> to vector<16x1xf32>
    %cst_3 = arith.constant 1.600000e+01 : f32
    %10 = vector.broadcast %cst_3 : f32 to vector<16x1xf32>
    %11 = arith.divf %9, %10 : vector<16x1xf32>
    %12 = vector.broadcast %4 : vector<16x1xf32> to vector<16x16xf32>
    %13 = arith.subf %0, %12 : vector<16x16xf32>
    %cst_4 = arith.constant 9.99999974E-6 : f32
    %14 = vector.broadcast %cst_4 : f32 to vector<16x1xf32>
    %15 = arith.addf %11, %14 : vector<16x1xf32>
    %16 = math.rsqrt %15 : vector<16x1xf32>
    %17 = vector.broadcast %16 : vector<16x1xf32> to vector<16x16xf32>
    %18 = arith.mulf %13, %17 : vector<16x16xf32>
    %c0_5 = arith.constant 0 : index
    %c0_6 = arith.constant 0 : index
    %19 = vector.load %arg2[%c0_5, %c0_6] : memref<1x16xf32, #tpu.memory_space<vmem>>, vector<1x16xf32>
    %20 = vector.broadcast %19 : vector<1x16xf32> to vector<16x16xf32>
    %21 = arith.mulf %18, %20 : vector<16x16xf32>
    %c0_7 = arith.constant 0 : index
    %c0_8 = arith.constant 0 : index
    %22 = vector.load %arg3[%c0_7, %c0_8] : memref<1x16xf32, #tpu.memory_space<vmem>>, vector<1x16xf32>
    %23 = vector.broadcast %22 : vector<1x16xf32> to vector<16x16xf32>
    %24 = arith.addf %21, %23 : vector<16x16xf32>
    %25 = tpu.concatenate %24, %24, %24, %24, %24, %24, %24, %24 in 1 : vector<16x16xf32>, vector<16x16xf32>, vector<16x16xf32>, vector<16x16xf32>, vector<16x16xf32>, vector<16x16xf32>, vector<16x16xf32>, vector<16x16xf32> -> vector<16x128xf32>
    %c0_9 = arith.constant 0 : index
    %c0_10 = arith.constant 0 : index
    %26 = vector.load %arg4[%c0_9, %c0_10] : memref<1x128xf32, #tpu.memory_space<vmem>>, vector<1x128xf32>
    %27 = vector.broadcast %26 : vector<1x128xf32> to vector<16x128xf32>
    %28 = arith.subf %25, %27 : vector<16x128xf32>
    %cst_11 = arith.constant 1.750000e+00 : f32
    %29 = vector.broadcast %cst_11 : f32 to vector<16x128xf32>
    %30 = arith.mulf %28, %29 : vector<16x128xf32>
    %31 = arith.mulf %30, %30 : vector<16x128xf32>
    %cst_12 = arith.constant 0.000000e+00 : f32
    %32 = vector.broadcast %cst_12 : f32 to vector<16x128xf32>
    %33 = arith.subf %32, %31 : vector<16x128xf32>
    %34 = math.exp %33 : vector<16x128xf32>
    %c0_13 = arith.constant 0 : index
    %c0_14 = arith.constant 0 : index
    %35 = vector.load %arg5[%c0_13, %c0_14] : memref<128x32xf32, #tpu.memory_space<vmem>>, vector<128x32xf32>
    %cst_15 = arith.constant dense<0.000000e+00> : vector<16x32xf32>
    %36 = tpu.matmul %34, %35, %cst_15 {dimension_numbers = #tpu.dot_dimension_numbers<[1], [0], [0], [1], [0, 0, 1, 1], [], []>} : vector<16x128xf32>, vector<128x32xf32>, vector<16x32xf32> -> vector<16x32xf32>
    %37 = arith.negf %0 : vector<16x16xf32>
    %38 = math.exp %37 : vector<16x16xf32>
    %cst_16 = arith.constant 1.000000e+00 : f32
    %39 = vector.broadcast %cst_16 : f32 to vector<16x16xf32>
    %40 = arith.addf %39, %38 : vector<16x16xf32>
    %41 = arith.divf %39, %40 : vector<16x16xf32>
    %42 = arith.mulf %0, %41 : vector<16x16xf32>
    %c0_17 = arith.constant 0 : index
    %c0_18 = arith.constant 0 : index
    %43 = vector.load %arg6[%c0_17, %c0_18] : memref<16x32xf32, #tpu.memory_space<vmem>>, vector<16x32xf32>
    %cst_19 = arith.constant dense<0.000000e+00> : vector<16x32xf32>
    %44 = tpu.matmul %42, %43, %cst_19 {dimension_numbers = #tpu.dot_dimension_numbers<[1], [0], [0], [1], [0, 0, 1, 1], [], []>} : vector<16x16xf32>, vector<16x32xf32>, vector<16x32xf32> -> vector<16x32xf32>
    %45 = arith.addf %36, %44 : vector<16x32xf32>
    %c0_20 = arith.constant 0 : index
    %c0_21 = arith.constant 0 : index
    %46 = vector.load %arg7[%c0_20, %c0_21] : memref<1x32xf32, #tpu.memory_space<vmem>>, vector<1x32xf32>
    %47 = vector.broadcast %46 : vector<1x32xf32> to vector<16x32xf32>
    %48 = arith.addf %45, %47 : vector<16x32xf32>
    %cst_22 = arith.constant dense<0.000000e+00> : vector<16xf32>
    %49 = vector.multi_reduction <add>, %48, %cst_22 [1] : vector<16x32xf32> to vector<16xf32>
    %50 = vector.shape_cast %49 : vector<16xf32> to vector<16x1xf32>
    %cst_23 = arith.constant 3.200000e+01 : f32
    %51 = vector.broadcast %cst_23 : f32 to vector<16x1xf32>
    %52 = arith.divf %50, %51 : vector<16x1xf32>
    %53 = vector.broadcast %52 : vector<16x1xf32> to vector<16x32xf32>
    %54 = arith.subf %48, %53 : vector<16x32xf32>
    %55 = arith.mulf %54, %54 : vector<16x32xf32>
    %cst_24 = arith.constant dense<0.000000e+00> : vector<16xf32>
    %56 = vector.multi_reduction <add>, %55, %cst_24 [1] : vector<16x32xf32> to vector<16xf32>
    %57 = vector.shape_cast %56 : vector<16xf32> to vector<16x1xf32>
    %cst_25 = arith.constant 3.200000e+01 : f32
    %58 = vector.broadcast %cst_25 : f32 to vector<16x1xf32>
    %59 = arith.divf %57, %58 : vector<16x1xf32>
    %60 = vector.broadcast %52 : vector<16x1xf32> to vector<16x32xf32>
    %61 = arith.subf %48, %60 : vector<16x32xf32>
    %cst_26 = arith.constant 9.99999974E-6 : f32
    %62 = vector.broadcast %cst_26 : f32 to vector<16x1xf32>
    %63 = arith.addf %59, %62 : vector<16x1xf32>
    %64 = math.rsqrt %63 : vector<16x1xf32>
    %65 = vector.broadcast %64 : vector<16x1xf32> to vector<16x32xf32>
    %66 = arith.mulf %61, %65 : vector<16x32xf32>
    %c0_27 = arith.constant 0 : index
    %c0_28 = arith.constant 0 : index
    %67 = vector.load %arg8[%c0_27, %c0_28] : memref<1x32xf32, #tpu.memory_space<vmem>>, vector<1x32xf32>
    %68 = vector.broadcast %67 : vector<1x32xf32> to vector<16x32xf32>
    %69 = arith.mulf %66, %68 : vector<16x32xf32>
    %c0_29 = arith.constant 0 : index
    %c0_30 = arith.constant 0 : index
    %70 = vector.load %arg9[%c0_29, %c0_30] : memref<1x32xf32, #tpu.memory_space<vmem>>, vector<1x32xf32>
    %71 = vector.broadcast %70 : vector<1x32xf32> to vector<16x32xf32>
    %72 = arith.addf %69, %71 : vector<16x32xf32>
    %73 = tpu.concatenate %72, %72, %72, %72, %72, %72, %72, %72 in 1 : vector<16x32xf32>, vector<16x32xf32>, vector<16x32xf32>, vector<16x32xf32>, vector<16x32xf32>, vector<16x32xf32>, vector<16x32xf32>, vector<16x32xf32> -> vector<16x256xf32>
    %c0_31 = arith.constant 0 : index
    %c0_32 = arith.constant 0 : index
    %74 = vector.load %arg10[%c0_31, %c0_32] : memref<1x256xf32, #tpu.memory_space<vmem>>, vector<1x256xf32>
    %75 = vector.broadcast %74 : vector<1x256xf32> to vector<16x256xf32>
    %76 = arith.subf %73, %75 : vector<16x256xf32>
    %cst_33 = arith.constant 1.750000e+00 : f32
    %77 = vector.broadcast %cst_33 : f32 to vector<16x256xf32>
    %78 = arith.mulf %76, %77 : vector<16x256xf32>
    %79 = arith.mulf %78, %78 : vector<16x256xf32>
    %cst_34 = arith.constant 0.000000e+00 : f32
    %80 = vector.broadcast %cst_34 : f32 to vector<16x256xf32>
    %81 = arith.subf %80, %79 : vector<16x256xf32>
    %82 = math.exp %81 : vector<16x256xf32>
    %c0_35 = arith.constant 0 : index
    %c0_36 = arith.constant 0 : index
    %83 = vector.load %arg11[%c0_35, %c0_36] : memref<256x128xf32, #tpu.memory_space<vmem>>, vector<256x128xf32>
    %cst_37 = arith.constant dense<0.000000e+00> : vector<16x128xf32>
    %84 = tpu.matmul %82, %83, %cst_37 {dimension_numbers = #tpu.dot_dimension_numbers<[1], [0], [0], [1], [0, 0, 1, 1], [], []>} : vector<16x256xf32>, vector<256x128xf32>, vector<16x128xf32> -> vector<16x128xf32>
    %85 = arith.negf %48 : vector<16x32xf32>
    %86 = math.exp %85 : vector<16x32xf32>
    %cst_38 = arith.constant 1.000000e+00 : f32
    %87 = vector.broadcast %cst_38 : f32 to vector<16x32xf32>
    %88 = arith.addf %87, %86 : vector<16x32xf32>
    %89 = arith.divf %87, %88 : vector<16x32xf32>
    %90 = arith.mulf %48, %89 : vector<16x32xf32>
    %c0_39 = arith.constant 0 : index
    %c0_40 = arith.constant 0 : index
    %91 = vector.load %arg12[%c0_39, %c0_40] : memref<32x128xf32, #tpu.memory_space<vmem>>, vector<32x128xf32>
    %cst_41 = arith.constant dense<0.000000e+00> : vector<16x128xf32>
    %92 = tpu.matmul %90, %91, %cst_41 {dimension_numbers = #tpu.dot_dimension_numbers<[1], [0], [0], [1], [0, 0, 1, 1], [], []>} : vector<16x32xf32>, vector<32x128xf32>, vector<16x128xf32> -> vector<16x128xf32>
    %93 = arith.addf %84, %92 : vector<16x128xf32>
    %c0_42 = arith.constant 0 : index
    %c0_43 = arith.constant 0 : index
    %94 = vector.load %arg13[%c0_42, %c0_43] : memref<1x128xf32, #tpu.memory_space<vmem>>, vector<1x128xf32>
    %95 = vector.broadcast %94 : vector<1x128xf32> to vector<16x128xf32>
    %96 = arith.addf %93, %95 : vector<16x128xf32>
    %c0_44 = arith.constant 0 : index
    %c0_45 = arith.constant 0 : index
    %97 = vector.load %arg14[%c0_44, %c0_45] : memref<16x128xf32, #tpu.memory_space<vmem>>, vector<16x128xf32>
    tpu.vector_store %arg14[%c0_44, %c0_45], %96 {strides = array<i32>} : memref<16x128xf32, #tpu.memory_space<vmem>>, vector<16x128xf32>,
    return
  }
  func.func @transform_0(%arg0: i32) -> (i32, i32) {
    %c0_i32 = arith.constant 0 : i32
    %c0_i32_0 = arith.constant 0 : i32
    return %arg0, %c0_i32 : i32, i32
  }
  func.func @transform_1(%arg0: i32) -> (i32, i32) {
    %c0_i32 = arith.constant 0 : i32
    %c0_i32_0 = arith.constant 0 : i32
    %c0_i32_1 = arith.constant 0 : i32
    return %c0_i32, %c0_i32_0 : i32, i32
  }
  func.func @transform_2(%arg0: i32) -> (i32, i32) {
    %c0_i32 = arith.constant 0 : i32
    %c0_i32_0 = arith.constant 0 : i32
    %c0_i32_1 = arith.constant 0 : i32
    return %c0_i32, %c0_i32_0 : i32, i32
  }
  func.func @transform_3(%arg0: i32) -> (i32, i32) {
    %c0_i32 = arith.constant 0 : i32
    %c0_i32_0 = arith.constant 0 : i32
    %c0_i32_1 = arith.constant 0 : i32
    return %c0_i32, %c0_i32_0 : i32, i32
  }
  func.func @transform_4(%arg0: i32) -> (i32, i32) {
    %c0_i32 = arith.constant 0 : i32
    %c0_i32_0 = arith.constant 0 : i32
    %c0_i32_1 = arith.constant 0 : i32
    return %c0_i32, %c0_i32_0 : i32, i32
  }
  func.func @transform_5(%arg0: i32) -> (i32, i32) {
    %c0_i32 = arith.constant 0 : i32
    %c0_i32_0 = arith.constant 0 : i32
    %c0_i32_1 = arith.constant 0 : i32
    return %c0_i32, %c0_i32_0 : i32, i32
  }
  func.func @transform_6(%arg0: i32) -> (i32, i32) {
    %c0_i32 = arith.constant 0 : i32
    %c0_i32_0 = arith.constant 0 : i32
    %c0_i32_1 = arith.constant 0 : i32
    return %c0_i32, %c0_i32_0 : i32, i32
  }
  func.func @transform_7(%arg0: i32) -> (i32, i32) {
    %c0_i32 = arith.constant 0 : i32
    %c0_i32_0 = arith.constant 0 : i32
    %c0_i32_1 = arith.constant 0 : i32
    return %c0_i32, %c0_i32_0 : i32, i32
  }
  func.func @transform_8(%arg0: i32) -> (i32, i32) {
    %c0_i32 = arith.constant 0 : i32
    %c0_i32_0 = arith.constant 0 : i32
    %c0_i32_1 = arith.constant 0 : i32
    return %c0_i32, %c0_i32_0 : i32, i32
  }
  func.func @transform_9(%arg0: i32) -> (i32, i32) {
    %c0_i32 = arith.constant 0 : i32
    %c0_i32_0 = arith.constant 0 : i32
    %c0_i32_1 = arith.constant 0 : i32
    return %c0_i32, %c0_i32_0 : i32, i32
  }
  func.func @transform_10(%arg0: i32) -> (i32, i32) {
    %c0_i32 = arith.constant 0 : i32
    %c0_i32_0 = arith.constant 0 : i32
    %c0_i32_1 = arith.constant 0 : i32
    return %c0_i32, %c0_i32_0 : i32, i32
  }
  func.func @transform_11(%arg0: i32) -> (i32, i32) {
    %c0_i32 = arith.constant 0 : i32
    %c0_i32_0 = arith.constant 0 : i32
    %c0_i32_1 = arith.constant 0 : i32
    return %c0_i32, %c0_i32_0 : i32, i32
  }
  func.func @transform_12(%arg0: i32) -> (i32, i32) {
    %c0_i32 = arith.constant 0 : i32
    %c0_i32_0 = arith.constant 0 : i32
    %c0_i32_1 = arith.constant 0 : i32
    return %c0_i32, %c0_i32_0 : i32, i32
  }
  func.func @transform_13(%arg0: i32) -> (i32, i32) {
    %c0_i32 = arith.constant 0 : i32
    %c0_i32_0 = arith.constant 0 : i32
    return %arg0, %c0_i32 : i32, i32
  }
}

module attributes {stable_mosaic.version = 11 : i64} {
  func.func @fastkan_kernel(%arg0: i32, %arg1: memref<16x16xf32, #tpu.memory_space<vmem>>, %arg2: memref<1x16xf32, #tpu.memory_space<vmem>>, %arg3: memref<1x16xf32, #tpu.memory_space<vmem>>, %arg4: memref<1x128xf32, #tpu.memory_space<vmem>>, %arg5: memref<128x32xf32, #tpu.memory_space<vmem>>, %arg6: memref<16x32xf32, #tpu.memory_space<vmem>>, %arg7: memref<1x32xf32, #tpu.memory_space<vmem>>, %arg8: memref<1x32xf32, #tpu.memory_space<vmem>>, %arg9: memref<1x32xf32, #tpu.memory_space<vmem>>, %arg10: memref<1x256xf32, #tpu.memory_space<vmem>>, %arg11: memref<256x128xf32, #tpu.memory_space<vmem>>, %arg12: memref<32x128xf32, #tpu.memory_space<vmem>>, %arg13: memref<1x128xf32, #tpu.memory_space<vmem>>, %arg14: memref<16x128xf32, #tpu.memory_space<vmem>>) attributes {dimension_semantics = [#tpu.dimension_semantics<parallel>], iteration_bounds = array<i64: 1>, scalar_prefetch = 0 : i64, scratch_operands = 0 : i64, tpu.core_type = #tpu.core_type<tc>, window_params = [{transform_indices = @transform_0, window_bounds = array<i64: 16, 16>}, {pipeline_mode = #tpu.pipeline_mode<synchronous>, transform_indices = @transform_1, window_bounds = array<i64: 1, 16>}, {pipeline_mode = #tpu.pipeline_mode<synchronous>, transform_indices = @transform_2, window_bounds = array<i64: 1, 16>}, {pipeline_mode = #tpu.pipeline_mode<synchronous>, transform_indices = @transform_3, window_bounds = array<i64: 1, 128>}, {pipeline_mode = #tpu.pipeline_mode<synchronous>, transform_indices = @transform_4, window_bounds = array<i64: 128, 32>}, {pipeline_mode = #tpu.pipeline_mode<synchronous>, transform_indices = @transform_5, window_bounds = array<i64: 16, 32>}, {pipeline_mode = #tpu.pipeline_mode<synchronous>, transform_indices = @transform_6, window_bounds = array<i64: 1, 32>}, {pipeline_mode = #tpu.pipeline_mode<synchronous>, transform_indices = @transform_7, window_bounds = array<i64: 1, 32>}, {pipeline_mode = #tpu.pipeline_mode<synchronous>, transform_indices = @transform_8, window_bounds = array<i64: 1, 32>}, {pipeline_mode = #tpu.pipeline_mode<synchronous>, transform_indices = @transform_9, window_bounds = array<i64: 1, 256>}, {pipeline_mode = #tpu.pipeline_mode<synchronous>, transform_indices = @transform_10, window_bounds = array<i64: 256, 128>}, {pipeline_mode = #tpu.pipeline_mode<synchronous>, transform_indices = @transform_11, window_bounds = array<i64: 32, 128>}, {pipeline_mode = #tpu.pipeline_mode<synchronous>, transform_indices = @transform_12, window_bounds = array<i64: 1, 128>}, {transform_indices = @transform_13, window_bounds = array<i64: 16, 128>}]} {
    %c0 = arith.constant 0 : index
    %c0_0 = arith.constant 0 : index
    %0 = vector.load %arg1[%c0, %c0_0] : memref<16x16xf32, #tpu.memory_space<vmem>>, vector<16x16xf32>
    %cst = arith.constant dense<0.000000e+00> : vector<16xf32>
    %1 = vector.multi_reduction <add>, %0, %cst [1] : vector<16x16xf32> to vector<16xf32>
    %2 = vector.shape_cast %1 : vector<16xf32> to vector<16x1xf32>
    %cst_1 = arith.constant 1.600000e+01 : f32
    %3 = vector.broadcast %cst_1 : f32 to vector<16x1xf32>
    %4 = arith.divf %2, %3 : vector<16x1xf32>
    %5 = vector.broadcast %4 : vector<16x1xf32> to vector<16x16xf32>
    %6 = arith.subf %0, %5 : vector<16x16xf32>
    %7 = arith.mulf %6, %6 : vector<16x16xf32>
    %cst_2 = arith.constant dense<0.000000e+00> : vector<16xf32>
    %8 = vector.multi_reduction <add>, %7, %cst_2 [1] : vector<16x16xf32> to vector<16xf32>
    %9 = vector.shape_cast %8 : vector<16xf32> to vector<16x1xf32>
    %cst_3 = arith.constant 1.600000e+01 : f32
    %10 = vector.broadcast %cst_3 : f32 to vector<16x1xf32>
    %11 = arith.divf %9, %10 : vector<16x1xf32>
    %12 = vector.broadcast %4 : vector<16x1xf32> to vector<16x16xf32>
    %13 = arith.subf %0, %12 : vector<16x16xf32>
    %cst_4 = arith.constant 9.99999974E-6 : f32
    %14 = vector.broadcast %cst_4 : f32 to vector<16x1xf32>
    %15 = arith.addf %11, %14 : vector<16x1xf32>
    %16 = math.rsqrt %15 : vector<16x1xf32>
    %17 = vector.broadcast %16 : vector<16x1xf32> to vector<16x16xf32>
    %18 = arith.mulf %13, %17 : vector<16x16xf32>
    %c0_5 = arith.constant 0 : index
    %c0_6 = arith.constant 0 : index
    %19 = vector.load %arg2[%c0_5, %c0_6] : memref<1x16xf32, #tpu.memory_space<vmem>>, vector<1x16xf32>
    %20 = vector.broadcast %19 : vector<1x16xf32> to vector<16x16xf32>
    %21 = arith.mulf %18, %20 : vector<16x16xf32>
    %c0_7 = arith.constant 0 : index
    %c0_8 = arith.constant 0 : index
    %22 = vector.load %arg3[%c0_7, %c0_8] : memref<1x16xf32, #tpu.memory_space<vmem>>, vector<1x16xf32>
    %23 = vector.broadcast %22 : vector<1x16xf32> to vector<16x16xf32>
    %24 = arith.addf %21, %23 : vector<16x16xf32>
    %25 = tpu.concatenate %24, %24, %24, %24, %24, %24, %24, %24 in 1 : vector<16x16xf32>, vector<16x16xf32>, vector<16x16xf32>, vector<16x16xf32>, vector<16x16xf32>, vector<16x16xf32>, vector<16x16xf32>, vector<16x16xf32> -> vector<16x128xf32>
    %c0_9 = arith.constant 0 : index
    %c0_10 = arith.constant 0 : index
    %26 = vector.load %arg4[%c0_9, %c0_10] : memref<1x128xf32, #tpu.memory_space<vmem>>, vector<1x128xf32>
    %27 = vector.broadcast %26 : vector<1x128xf32> to vector<16x128xf32>
    %28 = arith.subf %25, %27 : vector<16x128xf32>
    %cst_11 = arith.constant 1.750000e+00 : f32
    %29 = vector.broadcast %cst_11 : f32 to vector<16x128xf32>
    %30 = arith.mulf %28, %29 : vector<16x128xf32>
    %31 = arith.mulf %30, %30 : vector<16x128xf32>
    %cst_12 = arith.constant 0.000000e+00 : f32
    %32 = vector.broadcast %cst_12 : f32 to vector<16x128xf32>
    %33 = arith.subf %32, %31 : vector<16x128xf32>
    %34 = math.exp %33 : vector<16x128xf32>
    %c0_13 = arith.constant 0 : index
    %c0_14 = arith.constant 0 : index
    %35 = vector.load %arg5[%c0_13, %c0_14] : memref<128x32xf32, #tpu.memory_space<vmem>>, vector<128x32xf32>
    %cst_15 = arith.constant dense<0.000000e+00> : vector<16x32xf32>
    %36 = tpu.matmul %34, %35, %cst_15 {dimension_numbers = #tpu.dot_dimension_numbers<[1], [0], [0], [1], [0, 0, 1, 1], [], []>} : vector<16x128xf32>, vector<128x32xf32>, vector<16x32xf32> -> vector<16x32xf32>
    %37 = arith.negf %0 : vector<16x16xf32>
    %38 = math.exp %37 : vector<16x16xf32>
    %cst_16 = arith.constant 1.000000e+00 : f32
    %39 = vector.broadcast %cst_16 : f32 to vector<16x16xf32>
    %40 = arith.addf %39, %38 : vector<16x16xf32>
    %41 = arith.divf %39, %40 : vector<16x16xf32>
    %42 = arith.mulf %0, %41 : vector<16x16xf32>
    %c0_17 = arith.constant 0 : index
    %c0_18 = arith.constant 0 : index
    %43 = vector.load %arg6[%c0_17, %c0_18] : memref<16x32xf32, #tpu.memory_space<vmem>>, vector<16x32xf32>
    %cst_19 = arith.constant dense<0.000000e+00> : vector<16x32xf32>
    %44 = tpu.matmul %42, %43, %cst_19 {dimension_numbers = #tpu.dot_dimension_numbers<[1], [0], [0], [1], [0, 0, 1, 1], [], []>} : vector<16x16xf32>, vector<16x32xf32>, vector<16x32xf32> -> vector<16x32xf32>
    %45 = arith.addf %36, %44 : vector<16x32xf32>
    %c0_20 = arith.constant 0 : index
    %c0_21 = arith.constant 0 : index
    %46 = vector.load %arg7[%c0_20, %c0_21] : memref<1x32xf32, #tpu.memory_space<vmem>>, vector<1x32xf32>
    %47 = vector.broadcast %46 : vector<1x32xf32> to vector<16x32xf32>
    %48 = arith.addf %45, %47 : vector<16x32xf32>
    %cst_22 = arith.constant dense<0.000000e+00> : vector<16xf32>
    %49 = vector.multi_reduction <add>, %48, %cst_22 [1] : vector<16x32xf32> to vector<16xf32>
    %50 = vector.shape_cast %49 : vector<16xf32> to vector<16x1xf32>
    %cst_23 = arith.constant 3.200000e+01 : f32
    %51 = vector.broadcast %cst_23 : f32 to vector<16x1xf32>
    %52 = arith.divf %50, %51 : vector<16x1xf32>
    %53 = vector.broadcast %52 : vector<16x1xf32> to vector<16x32xf32>
    %54 = arith.subf %48, %53 : vector<16x32xf32>
    %55 = arith.mulf %54, %54 : vector<16x32xf32>
    %cst_24 = arith.constant dense<0.000000e+00> : vector<16xf32>
    %56 = vector.multi_reduction <add>, %55, %cst_24 [1] : vector<16x32xf32> to vector<16xf32>
    %57 = vector.shape_cast %56 : vector<16xf32> to vector<16x1xf32>
    %cst_25 = arith.constant 3.200000e+01 : f32
    %58 = vector.broadcast %cst_25 : f32 to vector<16x1xf32>
    %59 = arith.divf %57, %58 : vector<16x1xf32>
    %60 = vector.broadcast %52 : vector<16x1xf32> to vector<16x32xf32>
    %61 = arith.subf %48, %60 : vector<16x32xf32>
    %cst_26 = arith.constant 9.99999974E-6 : f32
    %62 = vector.broadcast %cst_26 : f32 to vector<16x1xf32>
    %63 = arith.addf %59, %62 : vector<16x1xf32>
    %64 = math.rsqrt %63 : vector<16x1xf32>
    %65 = vector.broadcast %64 : vector<16x1xf32> to vector<16x32xf32>
    %66 = arith.mulf %61, %65 : vector<16x32xf32>
    %c0_27 = arith.constant 0 : index
    %c0_28 = arith.constant 0 : index
    %67 = vector.load %arg8[%c0_27, %c0_28] : memref<1x32xf32, #tpu.memory_space<vmem>>, vector<1x32xf32>
    %68 = vector.broadcast %67 : vector<1x32xf32> to vector<16x32xf32>
    %69 = arith.mulf %66, %68 : vector<16x32xf32>
    %c0_29 = arith.constant 0 : index
    %c0_30 = arith.constant 0 : index
    %70 = vector.load %arg9[%c0_29, %c0_30] : memref<1x32xf32, #tpu.memory_space<vmem>>, vector<1x32xf32>
    %71 = vector.broadcast %70 : vector<1x32xf32> to vector<16x32xf32>
    %72 = arith.addf %69, %71 : vector<16x32xf32>
    %73 = tpu.concatenate %72, %72, %72, %72, %72, %72, %72, %72 in 1 : vector<16x32xf32>, vector<16x32xf32>, vector<16x32xf32>, vector<16x32xf32>, vector<16x32xf32>, vector<16x32xf32>, vector<16x32xf32>, vector<16x32xf32> -> vector<16x256xf32>
    %c0_31 = arith.constant 0 : index
    %c0_32 = arith.constant 0 : index
    %74 = vector.load %arg10[%c0_31, %c0_32] : memref<1x256xf32, #tpu.memory_space<vmem>>, vector<1x256xf32>
    %75 = vector.broadcast %74 : vector<1x256xf32> to vector<16x256xf32>
    %76 = arith.subf %73, %75 : vector<16x256xf32>
    %cst_33 = arith.constant 1.750000e+00 : f32
    %77 = vector.broadcast %cst_33 : f32 to vector<16x256xf32>
    %78 = arith.mulf %76, %77 : vector<16x256xf32>
    %79 = arith.mulf %78, %78 : vector<16x256xf32>
    %cst_34 = arith.constant 0.000000e+00 : f32
    %80 = vector.broadcast %cst_34 : f32 to vector<16x256xf32>
    %81 = arith.subf %80, %79 : vector<16x256xf32>
    %82 = math.exp %81 : vector<16x256xf32>
    %c0_35 = arith.constant 0 : index
    %c0_36 = arith.constant 0 : index
    %83 = vector.load %arg11[%c0_35, %c0_36] : memref<256x128xf32, #tpu.memory_space<vmem>>, vector<256x128xf32>
    %cst_37 = arith.constant dense<0.000000e+00> : vector<16x128xf32>
    %84 = tpu.matmul %82, %83, %cst_37 {dimension_numbers = #tpu.dot_dimension_numbers<[1], [0], [0], [1], [0, 0, 1, 1], [], []>} : vector<16x256xf32>, vector<256x128xf32>, vector<16x128xf32> -> vector<16x128xf32>
    %85 = arith.negf %48 : vector<16x32xf32>
    %86 = math.exp %85 : vector<16x32xf32>
    %cst_38 = arith.constant 1.000000e+00 : f32
    %87 = vector.broadcast %cst_38 : f32 to vector<16x32xf32>
    %88 = arith.addf %87, %86 : vector<16x32xf32>
    %89 = arith.divf %87, %88 : vector<16x32xf32>
    %90 = arith.mulf %48, %89 : vector<16x32xf32>
    %c0_39 = arith.constant 0 : index
    %c0_40 = arith.constant 0 : index
    %91 = vector.load %arg12[%c0_39, %c0_40] : memref<32x128xf32, #tpu.memory_space<vmem>>, vector<32x128xf32>
    %cst_41 = arith.constant dense<0.000000e+00> : vector<16x128xf32>
    %92 = tpu.matmul %90, %91, %cst_41 {dimension_numbers = #tpu.dot_dimension_numbers<[1], [0], [0], [1], [0, 0, 1, 1], [], []>} : vector<16x32xf32>, vector<32x128xf32>, vector<16x128xf32> -> vector<16x128xf32>
    %93 = arith.addf %84, %92 : vector<16x128xf32>
    %c0_42 = arith.constant 0 : index
    %c0_43 = arith.constant 0 : index
    %94 = vector.load %arg13[%c0_42, %c0_43] : memref<1x128xf32, #tpu.memory_space<vmem>>, vector<1x128xf32>
    %95 = vector.broadcast %94 : vector<1x128xf32> to vector<16x128xf32>
    %96 = arith.addf %93, %95 : vector<16x128xf32>
    %c0_44 = arith.constant 0 : index
    %c0_45 = arith.constant 0 : index
    %97 = vector.load %arg14[%c0_44, %c0_45] : memref<16x128xf32, #tpu.memory_space<vmem>>, vector<16x128xf32>
    tpu.vector_store %arg14[%c0_44, %c0_45], %96 {strides = array<i32>} : memref<16x128xf32, #tpu.memory_space<vmem>>, vector<16x128xf32>,
    return
  }
  func.func @transform_0(%arg0: i32) -> (i32, i32) {
    %c0_i32 = arith.constant 0 : i32
    %c0_i32_0 = arith.constant 0 : i32
    return %arg0, %c0_i32 : i32, i32
  }
  func.func @transform_1(%arg0: i32) -> (i32, i32) {
    %c0_i32 = arith.constant 0 : i32
    %c0_i32_0 = arith.constant 0 : i32
    %c0_i32_1 = arith.constant 0 : i32
    return %c0_i32, %c0_i32_0 : i32, i32
  }
  func.func @transform_2(%arg0: i32) -> (i32, i32) {
    %c0_i32 = arith.constant 0 : i32
    %c0_i32_0 = arith.constant 0 : i32
    %c0_i32_1 = arith.constant 0 : i32
    return %c0_i32, %c0_i32_0 : i32, i32
  }
  func.func @transform_3(%arg0: i32) -> (i32, i32) {
    %c0_i32 = arith.constant 0 : i32
    %c0_i32_0 = arith.constant 0 : i32
    %c0_i32_1 = arith.constant 0 : i32
    return %c0_i32, %c0_i32_0 : i32, i32
  }
  func.func @transform_4(%arg0: i32) -> (i32, i32) {
    %c0_i32 = arith.constant 0 : i32
    %c0_i32_0 = arith.constant 0 : i32
    %c0_i32_1 = arith.constant 0 : i32
    return %c0_i32, %c0_i32_0 : i32, i32
  }
  func.func @transform_5(%arg0: i32) -> (i32, i32) {
    %c0_i32 = arith.constant 0 : i32
    %c0_i32_0 = arith.constant 0 : i32
    %c0_i32_1 = arith.constant 0 : i32
    return %c0_i32, %c0_i32_0 : i32, i32
  }
  func.func @transform_6(%arg0: i32) -> (i32, i32) {
    %c0_i32 = arith.constant 0 : i32
    %c0_i32_0 = arith.constant 0 : i32
    %c0_i32_1 = arith.constant 0 : i32
    return %c0_i32, %c0_i32_0 : i32, i32
  }
  func.func @transform_7(%arg0: i32) -> (i32, i32) {
    %c0_i32 = arith.constant 0 : i32
    %c0_i32_0 = arith.constant 0 : i32
    %c0_i32_1 = arith.constant 0 : i32
    return %c0_i32, %c0_i32_0 : i32, i32
  }
  func.func @transform_8(%arg0: i32) -> (i32, i32) {
    %c0_i32 = arith.constant 0 : i32
    %c0_i32_0 = arith.constant 0 : i32
    %c0_i32_1 = arith.constant 0 : i32
    return %c0_i32, %c0_i32_0 : i32, i32
  }
  func.func @transform_9(%arg0: i32) -> (i32, i32) {
    %c0_i32 = arith.constant 0 : i32
    %c0_i32_0 = arith.constant 0 : i32
    %c0_i32_1 = arith.constant 0 : i32
    return %c0_i32, %c0_i32_0 : i32, i32
  }
  func.func @transform_10(%arg0: i32) -> (i32, i32) {
    %c0_i32 = arith.constant 0 : i32
    %c0_i32_0 = arith.constant 0 : i32
    %c0_i32_1 = arith.constant 0 : i32
    return %c0_i32, %c0_i32_0 : i32, i32
  }
  func.func @transform_11(%arg0: i32) -> (i32, i32) {
    %c0_i32 = arith.constant 0 : i32
    %c0_i32_0 = arith.constant 0 : i32
    %c0_i32_1 = arith.constant 0 : i32
    return %c0_i32, %c0_i32_0 : i32, i32
  }
  func.func @transform_12(%arg0: i32) -> (i32, i32) {
    %c0_i32 = arith.constant 0 : i32
    %c0_i32_0 = arith.constant 0 : i32
    %c0_i32_1 = arith.constant 0 : i32
    return %c0_i32, %c0_i32_0 : i32, i32
  }
  func.func @transform_13(%arg0: i32) -> (i32, i32) {
    %c0_i32 = arith.constant 0 : i32
    %c0_i32_0 = arith.constant 0 : i32
    return %arg0, %c0_i32 : i32, i32
  }
}

</mosaic_0001>

<bundles_post_ra>
// kernel: tpu_custom_call.1
= control target key start
LH: loop header
LB: loop body
LE: loop exit
PB: predicated region body
PF: predicated region fallthrough
CT: control target
= control target key end

     0   :  { %18 = vsyncpa [#allocation3], 0  ;;  %s1025_s0 = inlined_call_operand.vmem [shape: f32[16,16], index: 0, kind: input, shape index: {}]   ;;  %s1026_s1 = inlined_call_operand.vmem [shape: f32[1,16], index: 1, kind: input, shape index: {}]   ;;  %s1027_s2 = inlined_call_operand.vmem [shape: f32[1,16], index: 2, kind: input, shape index: {}]   ;;  %s1028_s3 = inlined_call_operand.vmem [shape: f32[1,128], index: 3, kind: input, shape index: {}]   ;;  %s1029_s4 = inlined_call_operand.vmem [shape: f32[128,32], index: 4, kind: input, shape index: {}]   ;;  %s1030_s5 = inlined_call_operand.vmem [shape: f32[16,32], index: 5, kind: input, shape index: {}]   ;;  %s1031_s6 = inlined_call_operand.vmem [shape: f32[1,32], index: 6, kind: input, shape index: {}]   ;;  %s1032_s7 = inlined_call_operand.vmem [shape: f32[1,32], index: 7, kind: input, shape index: {}]   ;;  %s1033_s8 = inlined_call_operand.vmem [shape: f32[1,32], index: 8, kind: input, shape index: {}]   ;;  %s1034_s9 = inlined_call_operand.vmem [shape: f32[1,256], index: 9, kind: input, shape index: {}]   ;;  %s1035_s10 = inlined_call_operand.hbm [shape: f32[256,128], index: 10, kind: input, shape index: {}]   ;;  %s1036_s11 = inlined_call_operand.vmem [shape: f32[32,128], index: 11, kind: input, shape index: {}]   ;;  %s1037_s12 = inlined_call_operand.vmem [shape: f32[1,128], index: 12, kind: input, shape index: {}]   ;;  %s1038_s13 = inlined_call_operand.hbm [shape: f32[16,128], index: 13, kind: output, shape index: {}]  }
   0x1   :  { %19 = vsyncpa [#allocation4], 0  ;;  %s44_s27 = sshll.u32 %s1035_s10, 4  ;;  %s740_s28 = smov [#allocation2]   ;;  %s45_s27 = int_to_ptr.hbm [resolvable:$true] %s44_s27 }
   0x2   :  { %s46_s29 = sshll.u32 %s740_s28, 4  ;;  %s741_s30 = smov 128   ;;  %s47_s29 = int_to_ptr.vmem [resolvable:$true] %s46_s29 }
   0x3   :  { %s742_s14 = smov 8  }
   0x4   :  { %52 = dma.hbm_to_vmem [thread:$0]  %s45_s27, 4096, %s47_s29, [#allocation3], %s741_s30, %s741_s30, %s742_s14  }
   0x5   :  { %736 = dma.done.wait [#allocation3], 4096  }
   0x6   :  { %737 = vsyncadd [#allocation3], 4294963200  ;;  %vm63_vm0 = vcmask 130048   ;;  %v832_v0 = vld [vmem:[%s1025_s0] sm:$0xff]  ;;  %v839_v2 = vld [vmem:[%s1025_s0 + $0x8] sm:$0xff]  ;;  %v743_v4 = vmov 16.0  }
   0x7   :  { %v64_v1 = vsel %vm63_vm0, %v832_v0, 0.0  ;;  %v67_v3 = vsel %vm63_vm0, %v839_v2, 0.0  ;;  %648 = vrcp.f32 %v743_v4  ;;  %v641_v35 = vld [vmem:[%s1026_s1] ss:$0 sm:$0xff]  ;;  %s744_s21 = smov 48   ;;  %s745_s1 = smov 16  }
   0x8   :  { %65 = vadd.xlane.f32.xlu0 %v64_v1  ;;  %v642_v38 = vld [vmem:[%s1027_s2] ss:$0 sm:$0xff]  ;;  %s746_s22 = smov 64   ;;  %s747_s2 = smov 32   ;;  %v620_v49 = vmul.f32 -1.442695, %v832_v0 }
   0x9   :  { %s748_s23 = smov 80   ;;  %s749_s24 = smov 96   ;;  %v222_v50 = vld [vmem:[%s1029_s4 + $0x78] sm:$0xff]  ;;  %v221_v51 = vld [vmem:[%s1029_s4 + $0x70] sm:$0xff]  ;;  %v220_v53 = vld [vmem:[%s1029_s4 + $0x68] sm:$0xff]  ;;  %vm173_vm12 = vcmask 261120  }
   0xa   :  { %s750_s25 = smov 112   ;;  %294 = vmatpush.msra.mxu1 %v222_v50  ;;  %v621_v55 = vmul.f32 -1.442695, %v839_v2  ;;  %v219_v56 = vld [vmem:[%s1029_s4 + $0x60] sm:$0xff]  ;;  %v218_v57 = vld [vmem:[%s1029_s4 + $0x58] sm:$0xff]  ;;  %v217_v58 = vld [vmem:[%s1029_s4 + $0x50] sm:$0xff] }
   0xb   :  { %v216_v59 = vld [vmem:[%s1029_s4 + $0x48] sm:$0xff]  ;;  %v215_v62 = vld [vmem:[%s1029_s4 + $0x40] sm:$0xff]  ;;  %vm176_vm13 = vcmask 392192   ;;  %vm179_vm14 = vcmask 523264   ;;  %vm182_vm15 = vcmask 654336   ;;  %s607_s27 = sshll.u32 %s1038_s13, 4  ;;  %s608_s27 = int_to_ptr.hbm [resolvable:$true] %s607_s27 }
   0xc   :  { %295 = vmatpush.msra.mxu1 %v221_v51 }
   0xd   :  { %v649_v5 = vpop.eup %648 }
   0xe   :  { %v71_v6 = vmul.f32 16.0, %v649_v5  ;;  %vm75_vm1 = vweird.f32 %v649_v5  ;;  %296 = vmatpush.msra.mxu1 %v220_v53 }
  0x10   :  { %68 = vadd.xlane.f32.xlu0 %v67_v3  ;;  %v72_v7 = vsub.f32 1.0, %v71_v6  ;;  %297 = vmatpush.msra.mxu1 %v219_v56  ;;  %v214_v3 = vld [vmem:[%s1029_s4 + $0x38] sm:$0xff] }
  0x12   :  { %v73_v8 = vmul.f32 %v649_v5, %v72_v7  ;;  %298 = vmatpush.msra.mxu1 %v218_v57 }
  0x14   :  { %v74_v9 = vadd.f32 %v649_v5, %v73_v8  ;;  %299 = vmatpush.msra.mxu1 %v217_v58 }
  0x16   :  { %v76_v10 = vsel %vm75_vm1, %v649_v5, %v74_v9  ;;  %300 = vmatpush.msra.mxu1 %v216_v59  ;;  %v213_v5 = vld [vmem:[%s1029_s4 + $0x30] sm:$0xff] }
  0x18   :  { %301 = vmatpush.msra.mxu1 %v215_v62 }
  0x1a   :  { %302 = vmatpush.msra.mxu1 %v214_v3 }
  0x1c   :  { %303 = vmatpush.msra.mxu1 %v213_v5 }
  0x7b   :  { %v66_v11 = vpop.xlane.xlu0 %65 }
  0x7c   :  { %v77_v12 = vmul.f32 %v76_v10, %v66_v11 }
  0x7e   :  { %v79_v13 = vsub.f32 %v832_v0, %v77_v12 }
  0x80   :  { %v81_v14 = vmul.f32 %v79_v13, %v79_v13 }
  0x82   :  { %v83_v15 = vsel %vm63_vm0, %v81_v14, 0.0  ;;  %v264_v14 = vld [vmem:[%s1030_s5 + $0x8] sm:$0xff] }
  0x83   :  { %84 = vadd.xlane.f32.xlu1 %v83_v15  ;;  %v69_v16 = vpop.xlane.xlu0 %68  ;;  %v211_v15 = vld [vmem:[%s1029_s4 + $0x20] sm:$0xff]  ;;  %285 = vmatpush.msra.mxu2 %v264_v14 }
  0x84   :  { %v78_v17 = vmul.f32 %v76_v10, %v69_v16 }
  0x86   :  { %v80_v18 = vsub.f32 %v839_v2, %v78_v17 }
  0x88   :  { %v82_v19 = vmul.f32 %v80_v18, %v80_v18 }
  0x8a   :  { %v86_v20 = vsel %vm63_vm0, %v82_v19, 0.0  ;;  %v210_v19 = vld [vmem:[%s1029_s4 + $0x18] sm:$0xff] }
  0x8b   :  { %87 = vadd.xlane.f32.xlu1 %v86_v20 }
  0xf6   :  { %v85_v21 = vpop.xlane.xlu1 %84 }
  0xf7   :  { %v89_v22 = vmul.f32 %v85_v21, %v76_v10  ;;  %v209_v21 = vld [vmem:[%s1029_s4 + $0x10] sm:$0xff] }
  0xf9   :  { %v91_v23 = vadd.f32 1e-05, %v89_v22  ;;  %v208_v22 = vld [vmem:[%s1029_s4 + $0x8] sm:$0xff] }
  0xfb   :  { %650 = vrsqrt.f32 %v91_v23  ;;  %vm99_vm3 = vweird.f32 %v91_v23 }
  0xfe   :  { %v88_v24 = vpop.xlane.xlu1 %87 }
  0xff   :  { %v90_v25 = vmul.f32 %v88_v24, %v76_v10  ;;  %v212_v10 = vld [vmem:[%s1029_s4 + $0x28] sm:$0xff] }
 0x100   :  { %304 = vmatpush.msra.mxu1 %v212_v10  ;;  %v517_v10 = vld [vmem:[%s1036_s11 + $0x18] sm:$0xff] }
 0x101   :  { %v651_v26 = vpop.eup %650  ;;  %v92_v27 = vadd.f32 1e-05, %v90_v25 }
 0x102   :  { %v94_v28 = vmul.f32 %v651_v26, %v91_v23  ;;  %vm100_vm2 = vweird.f32 %v651_v26  ;;  %305 = vmatpush.msra.mxu1 %v211_v15  ;;  %v515_v15 = vld [vmem:[%s1036_s11 + $0x8] sm:$0xff] }
 0x103   :  { %652 = vrsqrt.f32 %v92_v27  ;;  %vm101_vm4 = vmor %vm99_vm3, %vm100_vm2  ;;  %vm109_vm6 = vweird.f32 %v92_v27 }
 0x104   :  { %v95_v29 = vmul.f32 %v651_v26, %v94_v28  ;;  %654 = vpow2.f32 %v620_v49  ;;  %306 = vmatpush.msra.mxu1 %v210_v19 }
 0x106   :  { %v96_v30 = vmul.f32 0.5, %v95_v29  ;;  %307 = vmatpush.msra.mxu1 %v209_v21 }
 0x108   :  { %v97_v31 = vsub.f32 1.5, %v96_v30  ;;  %308 = vmatpush.msra.mxu1 %v208_v22 }
 0x109   :  { %v653_v32 = vpop.eup %652 }
 0x10a   :  { %v98_v33 = vmul.f32 %v651_v26, %v97_v31  ;;  %v104_v34 = vmul.f32 %v653_v32, %v92_v27  ;;  %vm110_vm5 = vweird.f32 %v653_v32  ;;  %v655_v52 = vpop.eup %654 }
 0x10b   :  { %vm111_vm7 = vmor %vm109_vm6, %vm110_vm5  ;;  %v229_v54 = vadd.f32 1.0, %v655_v52  ;;  %vm188_vm6 = vcmask 916480  }
 0x10c   :  { %v102_v36 = vsel %vm101_vm4, %v651_v26, %v98_v33  ;;  %v105_v37 = vmul.f32 %v653_v32, %v104_v34  ;;  %vm185_vm4 = vcmask 785408  }
 0x10d   :  { %v113_v39 = vmul.f32 %v102_v36, %v79_v13  ;;  %656 = vrcp.f32 %v229_v54  ;;  %v242_v8 = vand.u32 2147483648, %v229_v54  ;;  %vm236_vm8 = vweird.f32 %v229_v54 }
 0x10e   :  { %v106_v40 = vmul.f32 0.5, %v105_v37  ;;  %658 = vpow2.f32 %v621_v55  ;;  %v240_v12 = vand.u32 2147483647, %v229_v54 }
 0x10f   :  { %v119_v41 = vmul.f32 %v641_v35, %v113_v39  ;;  %v243_v13 = vor.u32 1.1754944e-38, %v242_v8 }
 0x110   :  { %v107_v42 = vsub.f32 1.5, %v106_v40  ;;  %vm241_vm11 = vcmp.eq.f32.partialorder %v240_v12, 8.507059e+37  ;;  %v516_v12 = vld [vmem:[%s1036_s11 + $0x10] sm:$0xff] }
 0x111   :  { %v853_v43 = vadd.f32 %v642_v38, %v119_v41  ;;  %v643_v41 = vld [vmem:[%s1028_s3] ss:$0 sm:$0xff] }
 0x112   :  { %v108_v44 = vmul.f32 %v653_v32, %v107_v42 }
 0x113   :  { %141 = vrot.lane.b32.xlu0 %v853_v43, %s744_s21  ;;  %129 = vrot.lane.b32.xlu2 %v853_v43, %s745_s1  ;;  %v657_v60 = vpop.eup %656 }
 0x114   :  { %v112_v45 = vsel %vm111_vm7, %v653_v32, %v108_v44  ;;  %147 = vrot.lane.b32.xlu1 %v853_v43, %s746_s22  ;;  %v232_v63 = vmul.f32 %v657_v60, %v229_v54  ;;  %v659_v1 = vpop.eup %658  ;;  %vm237_vm9 = vweird.f32 %v657_v60 }
 0x115   :  { %v114_v46 = vmul.f32 %v112_v45, %v80_v18  ;;  %v230_v7 = vadd.f32 1.0, %v659_v1  ;;  %vm238_vm10 = vmor %vm236_vm8, %vm237_vm9  ;;  %v263_v18 = vld [vmem:[%s1030_s5] sm:$0xff] }
 0x116   :  { %v233_v4 = vsub.f32 1.0, %v232_v63  ;;  %286 = vmatpush.msra.mxu2 %v263_v18 }
 0x117   :  { %v120_v47 = vmul.f32 %v641_v35, %v114_v46  ;;  %660 = vrcp.f32 %v230_v7  ;;  %v257_v34 = vand.u32 2147483648, %v230_v7  ;;  %vm251_vm1 = vweird.f32 %v230_v7 }
 0x118   :  { %v234_v6 = vmul.f32 %v657_v60, %v233_v4  ;;  %v255_v37 = vand.u32 2147483647, %v230_v7  ;;  %536 = vmatpush.msrb.mxu2 %v517_v10 }
 0x119   :  { %v859_v48 = vadd.f32 %v642_v38, %v120_v47  ;;  %v258_v38 = vor.u32 1.1754944e-38, %v257_v34 }
 0x11a   :  { %v235_v11 = vadd.f32 %v657_v60, %v234_v6  ;;  %vm256_vm5 = vcmp.eq.f32.partialorder %v255_v37, 8.507059e+37  ;;  %537 = vmatpush.msrb.mxu2 %v516_v12 }
 0x11b   :  { %135 = vrot.lane.b32.xlu2 %v853_v43, %s747_s2  ;;  %131 = vrot.lane.b32.xlu0 %v859_v48, %s745_s1 }
 0x11c   :  { %143 = vrot.lane.b32.xlu1 %v859_v48, %s744_s21  ;;  %v239_v16 = vsel %vm238_vm10, %v657_v60, %v235_v11  ;;  %538 = vmatpush.msrb.mxu2 %v515_v15 }
 0x11d   :  { %v244_v17 = vsel %vm241_vm11, %v243_v13, %v239_v16  ;;  %v661_v24 = vpop.eup %660  ;;  %v644_v13 = vld [vmem:[%s1031_s6] ss:$0 sm:$0xff] }
 0x11e   :  { %v261_v20 = vmul.f32 %v244_v17, %v832_v0  ;;  %v207_v0 = vld [vmem:[%s1029_s4] sm:$0xff]  ;;  %v247_v25 = vmul.f32 %v661_v24, %v230_v7  ;;  %vm252_vm2 = vweird.f32 %v661_v24 }
 0x11f   :  { %309 = vmatpush.msra.mxu1 %v207_v0  ;;  %vm253_vm3 = vmor %vm251_vm1, %vm252_vm2  ;;  %v514_v17 = vld [vmem:[%s1036_s11] sm:$0xff] }
 0x120   :  { %622 = vmatmul.msk.f32.vlgmr.msra.gmra.mxu2 %vm63_vm0, %v261_v20  ;;  %v248_v26 = vsub.f32 1.0, %v247_v25 }
 0x121   :  { %539 = vmatpush.msrb.mxu2 %v514_v17 }
 0x122   :  { %v249_v31 = vmul.f32 %v661_v24, %v248_v26 }
 0x123   :  { %153 = vrot.lane.b32.xlu2 %v853_v43, %s748_s23  ;;  %149 = vrot.lane.b32.xlu0 %v859_v48, %s746_s22 }
 0x124   :  { %161 = vrot.lane.b32.xlu1 %v859_v48, %s749_s24  ;;  %v250_v36 = vadd.f32 %v661_v24, %v249_v31 }
 0x126   :  { %v254_v39 = vsel %vm253_vm3, %v661_v24, %v250_v36 }
 0x127   :  { %v259_v42 = vsel %vm256_vm5, %v258_v38, %v254_v39 }
 0x12b   :  { %159 = vrot.lane.b32.xlu2 %v853_v43, %s749_s24  ;;  %167 = vrot.lane.b32.xlu0 %v859_v48, %s750_s25 }
 0x133   :  { %165 = vrot.lane.b32.xlu2 %v853_v43, %s750_s25 }
 0x13b   :  { %137 = vrot.lane.b32.xlu2 %v859_v48, %s747_s2 }
 0x143   :  { %155 = vrot.lane.b32.xlu2 %v859_v48, %s748_s23 }
 0x16d   :  { %v130_v61 = vpop.permute.xlu2 %129 }
 0x16e   :  { %v171_v27 = vsel %vm63_vm0, %v853_v43, %v130_v61  ;;  %v262_v43 = vmul.f32 %v259_v42, %v839_v2 }
 0x170   :  { %623 = vmatmul.msk.f32.gmra.mxu2 %vm63_vm0, %v262_v43 }
 0x175   :  { %v136_v9 = vpop.permute.xlu2 %135 }
 0x176   :  { %v174_v28 = vsel %vm173_vm12, %v171_v27, %v136_v9 }
 0x17d   :  { %v154_v23 = vpop.permute.xlu2 %153 }
 0x185   :  { %v160_v29 = vpop.permute.xlu2 %159  ;;  %v142_v30 = vpop.permute.xlu0 %141 }
 0x186   :  { %v148_v32 = vpop.permute.xlu1 %147  ;;  %v177_v33 = vsel %vm176_vm13, %v174_v28, %v142_v30 }
 0x187   :  { %v180_v35 = vsel %vm179_vm14, %v177_v33, %v148_v32 }
 0x188   :  { %v183_v40 = vsel %vm182_vm15, %v180_v35, %v154_v23 }
 0x189   :  { %v186_v45 = vsel %vm185_vm4, %v183_v40, %v160_v29 }
 0x18d   :  { %v166_v44 = vpop.permute.xlu2 %165  ;;  %v132_v46 = vpop.permute.xlu0 %131 }
 0x18e   :  { %v189_v47 = vsel %vm188_vm6, %v186_v45, %v166_v44  ;;  %v144_v52 = vpop.permute.xlu1 %143  ;;  %v172_v56 = vsel %vm63_vm0, %v859_v48, %v132_v46 }
 0x18f   :  { %v195_v49 = vsub.f32 %v189_v47, %v643_v41 }
 0x191   :  { %v197_v50 = vmul.f32 1.75, %v195_v49 }
 0x193   :  { %v199_v51 = vmul.f32 %v197_v50, %v197_v50 }
 0x195   :  { %v201_v53 = vsub.f32 0.0, %v199_v51  ;;  %v138_v54 = vpop.permute.xlu2 %137  ;;  %v150_v55 = vpop.permute.xlu0 %149 }
 0x196   :  { %v175_v2 = vsel %vm173_vm12, %v172_v56, %v138_v54  ;;  %v162_v61 = vpop.permute.xlu1 %161 }
 0x197   :  { %v203_v57 = vmul.f32 1.442695, %v201_v53  ;;  %v178_v58 = vsel %vm176_vm13, %v175_v2, %v144_v52  ;;  %v751_v53 = vmov 32.0  }
 0x198   :  { %v181_v59 = vsel %vm179_vm14, %v178_v58, %v150_v55 }
 0x199   :  { %662 = vpow2.f32 %v203_v57 }
 0x19d   :  { %v156_v60 = vpop.permute.xlu2 %155  ;;  %v168_v3 = vpop.permute.xlu0 %167 }
 0x19e   :  { %v184_v62 = vsel %vm182_vm15, %v181_v59, %v156_v60 }
 0x19f   :  { %v663_v63 = vpop.eup %662  ;;  %v187_v1 = vsel %vm185_vm4, %v184_v62, %v162_v61 }
 0x1a0   :  { %v190_v4 = vsel %vm188_vm6, %v187_v1, %v168_v3  ;;  %310 = vmatmul.f32.vlgmr.msra.gmra.mxu1 %v663_v63 }
 0x1a1   :  { %v196_v48 = vsub.f32 %v190_v4, %v643_v41 }
 0x1a3   :  { %v198_v5 = vmul.f32 1.75, %v196_v48  ;;  %v288_v11 = vpop.f32.mrf.mxu2 }
 0x1a5   :  { %v200_v6 = vmul.f32 %v198_v5, %v198_v5 }
 0x1a7   :  { %v202_v7 = vsub.f32 0.0, %v200_v6 }
 0x1a9   :  { %v205_v8 = vmul.f32 1.442695, %v202_v7 }
 0x1ab   :  { %664 = vpow2.f32 %v205_v8 }
 0x1b1   :  { %v665_v9 = vpop.eup %664 }
 0x1b2   :  { %313 = vmatmul.f32.gmra.mxu1 %v665_v9 }
 0x1f3   :  { %v291_v23 = vpop.f32.mrf.mxu2 }
 0x21d   :  { %v311_v14 = vpop.f32.mrf.mxu1 }
 0x21e   :  { %v312_v16 = vadd.f32 %v311_v14, %v288_v11 }
 0x220   :  { %v971_v18 = vadd.f32 %v644_v13, %v312_v16 }
 0x222   :  { %v624_v19 = vmul.f32 -1.442695, %v971_v18  ;;  %v323_v20 = vsel %vm173_vm12, %v971_v18, 0.0 }
 0x223   :  { %324 = vadd.xlane.f32.xlu2 %v323_v20 }
 0x224   :  { %666 = vpow2.f32 %v624_v19 }
 0x22a   :  { %v667_v21 = vpop.eup %666 }
 0x22b   :  { %v480_v22 = vadd.f32 1.0, %v667_v21  ;;  %v646_v21 = vld [vmem:[%s1033_s8] ss:$0 sm:$0xff] }
 0x22d   :  { %668 = vrcp.f32 %v480_v22  ;;  %v493_v31 = vand.u32 2147483648, %v480_v22  ;;  %v491_v33 = vand.u32 2147483647, %v480_v22  ;;  %vm487_vm7 = vweird.f32 %v480_v22 }
 0x22f   :  { %v314_v24 = vpop.f32.mrf.mxu1  ;;  %v494_v35 = vor.u32 1.1754944e-38, %v493_v31  ;;  %vm492_vm9 = vcmp.eq.f32.partialorder %v491_v33, 8.507059e+37  ;;  %v457_v33 = vld [vmem:[#allocation2 + $0x78] sm:$0xff] }
 0x230   :  { %v315_v0 = vadd.f32 %v314_v24, %v291_v23  ;;  %547 = vmatpush.msra.mxu3 %v457_v33 }
 0x232   :  { %v322_v25 = vadd.f32 %v644_v13, %v315_v0 }
 0x233   :  { %v669_v26 = vpop.eup %668 }
 0x234   :  { %v625_v27 = vmul.f32 -1.442695, %v322_v25  ;;  %v326_v28 = vsel %vm173_vm12, %v322_v25, 0.0  ;;  %v483_v29 = vmul.f32 %v669_v26, %v480_v22  ;;  %vm488_vm0 = vweird.f32 %v669_v26 }
 0x235   :  { %327 = vadd.xlane.f32.xlu1 %v326_v28  ;;  %vm489_vm8 = vmor %vm487_vm7, %vm488_vm0 }
 0x236   :  { %670 = vpow2.f32 %v625_v27  ;;  %v484_v30 = vsub.f32 1.0, %v483_v29 }
 0x238   :  { %v485_v32 = vmul.f32 %v669_v26, %v484_v30 }
 0x23a   :  { %v486_v34 = vadd.f32 %v669_v26, %v485_v32 }
 0x23c   :  { %v671_v36 = vpop.eup %670  ;;  %v490_v37 = vsel %vm489_vm8, %v669_v26, %v486_v34  ;;  %v473_v34 = vld [vmem:[#allocation2 + $0xf8] sm:$0xff] }
 0x23d   :  { %v481_v38 = vadd.f32 1.0, %v671_v36  ;;  %v495_v39 = vsel %vm492_vm9, %v494_v35, %v490_v37  ;;  %v456_v35 = vld [vmem:[#allocation2 + $0x70] sm:$0xff]  ;;  %570 = vmatpush.msra.mxu0 %v473_v34  ;;  %v455_v37 = vld [vmem:[#allocation2 + $0x68] sm:$0xff] }
 0x23e   :  { %v512_v40 = vmul.f32 %v495_v39, %v971_v18  ;;  %v472_v36 = vld [vmem:[#allocation2 + $0xf0] sm:$0xff]  ;;  %548 = vmatpush.msra.mxu3 %v456_v35  ;;  %v454_v39 = vld [vmem:[#allocation2 + $0x60] sm:$0xff] }
 0x23f   :  { %672 = vrcp.f32 %v481_v38  ;;  %v508_v44 = vand.u32 2147483648, %v481_v38  ;;  %v506_v46 = vand.u32 2147483647, %v481_v38  ;;  %vm502_vm11 = vweird.f32 %v481_v38  ;;  %571 = vmatpush.msra.mxu0 %v472_v36 }
 0x240   :  { %626 = vmatmul.msk.f32.vlgmr.msrb.gmra.mxu2 %vm173_vm12, %v512_v40  ;;  %674 = vrcp.f32 %v751_v53  ;;  %549 = vmatpush.msra.mxu3 %v455_v37  ;;  %v470_v40 = vld [vmem:[#allocation2 + $0xe0] sm:$0xff]  ;;  %v464_v53 = vld [vmem:[#allocation2 + $0xb0] sm:$0xff] }
 0x241   :  { %v509_v49 = vor.u32 1.1754944e-38, %v508_v44  ;;  %vm507_vm15 = vcmp.eq.f32.partialorder %v506_v46, 8.507059e+37  ;;  %v468_v44 = vld [vmem:[#allocation2 + $0xd0] sm:$0xff]  ;;  %v467_v46 = vld [vmem:[#allocation2 + $0xc8] sm:$0xff] }
 0x242   :  { %550 = vmatpush.msra.mxu3 %v454_v39 }
 0x245   :  { %v673_v41 = vpop.eup %672 }
 0x246   :  { %v498_v42 = vmul.f32 %v673_v41, %v481_v38  ;;  %vm503_vm10 = vweird.f32 %v673_v41  ;;  %v675_v54 = vpop.eup %674  ;;  %v471_v38 = vld [vmem:[#allocation2 + $0xe8] sm:$0xff] }
 0x247   :  { %vm504_vm13 = vmor %vm502_vm11, %vm503_vm10  ;;  %v330_v55 = vmul.f32 32.0, %v675_v54  ;;  %vm334_vm1 = vweird.f32 %v675_v54  ;;  %572 = vmatpush.msra.mxu0 %v471_v38 }
 0x248   :  { %v499_v43 = vsub.f32 1.0, %v498_v42  ;;  %v469_v42 = vld [vmem:[#allocation2 + $0xd8] sm:$0xff] }
 0x249   :  { %v331_v56 = vsub.f32 1.0, %v330_v55  ;;  %573 = vmatpush.msra.mxu0 %v470_v40  ;;  %v463_v55 = vld [vmem:[#allocation2 + $0xa8] sm:$0xff] }
 0x24a   :  { %v500_v45 = vmul.f32 %v673_v41, %v499_v43  ;;  %v452_v43 = vld [vmem:[#allocation2 + $0x50] sm:$0xff] }
 0x24b   :  { %v332_v57 = vmul.f32 %v675_v54, %v331_v56  ;;  %574 = vmatpush.msra.mxu0 %v469_v42  ;;  %v446_v56 = vld [vmem:[#allocation2 + $0x20] sm:$0xff] }
 0x24c   :  { %v501_v47 = vadd.f32 %v673_v41, %v500_v45  ;;  %v451_v45 = vld [vmem:[#allocation2 + $0x48] sm:$0xff] }
 0x24d   :  { %v333_v2 = vadd.f32 %v675_v54, %v332_v57  ;;  %575 = vmatpush.msra.mxu0 %v468_v44  ;;  %v462_v57 = vld [vmem:[#allocation2 + $0xa0] sm:$0xff] }
 0x24e   :  { %v505_v50 = vsel %vm504_vm13, %v673_v41, %v501_v47  ;;  %v453_v41 = vld [vmem:[#allocation2 + $0x58] sm:$0xff]  ;;  %v450_v47 = vld [vmem:[#allocation2 + $0x40] sm:$0xff] }
 0x24f   :  { %v510_v51 = vsel %vm507_vm15, %v509_v49, %v505_v50  ;;  %v335_v58 = vsel %vm334_vm1, %v675_v54, %v333_v2  ;;  %551 = vmatpush.msra.mxu3 %v453_v41  ;;  %576 = vmatpush.msra.mxu0 %v467_v46  ;;  %v466_v49 = vld [vmem:[#allocation2 + $0xc0] sm:$0xff]  ;;  %v449_v50 = vld [vmem:[#allocation2 + $0x38] sm:$0xff]  ;;  %v447_v54 = vld [vmem:[#allocation2 + $0x28] sm:$0xff] }
 0x250   :  { %v513_v52 = vmul.f32 %v510_v51, %v322_v25  ;;  %v465_v51 = vld [vmem:[#allocation2 + $0xb8] sm:$0xff] }
 0x251   :  { %552 = vmatpush.msra.mxu3 %v452_v43  ;;  %577 = vmatpush.msra.mxu0 %v466_v49  ;;  %v445_v2 = vld [vmem:[#allocation2 + $0x18] sm:$0xff]  ;;  %v647_v43 = vld [vmem:[%s1037_s12] ss:$0 sm:$0xff] }
 0x252   :  { %627 = vmatmul.msk.f32.gmra.mxu2 %vm173_vm12, %v513_v52  ;;  %v448_v52 = vld [vmem:[#allocation2 + $0x30] sm:$0xff] }
 0x253   :  { %553 = vmatpush.msra.mxu3 %v451_v45  ;;  %578 = vmatpush.msra.mxu0 %v465_v51 }
 0x255   :  { %554 = vmatpush.msra.mxu3 %v450_v47  ;;  %579 = vmatpush.msra.mxu0 %v464_v53 }
 0x257   :  { %555 = vmatpush.msra.mxu3 %v449_v50  ;;  %580 = vmatpush.msra.mxu0 %v463_v55 }
 0x259   :  { %556 = vmatpush.msra.mxu3 %v448_v52  ;;  %581 = vmatpush.msra.mxu0 %v462_v57 }
 0x25b   :  { %557 = vmatpush.msra.mxu3 %v447_v54 }
 0x25d   :  { %558 = vmatpush.msra.mxu3 %v446_v56 }
 0x25f   :  { %559 = vmatpush.msra.mxu3 %v445_v2 }
 0x296   :  { %v325_v59 = vpop.xlane.xlu2 %324 }
 0x297   :  { %v336_v60 = vmul.f32 %v335_v58, %v325_v59  ;;  %v444_v59 = vld [vmem:[#allocation2 + $0x10] sm:$0xff] }
 0x298   :  { %560 = vmatpush.msra.mxu3 %v444_v59 }
 0x299   :  { %v338_v61 = vsub.f32 %v971_v18, %v336_v60  ;;  %v645_v18 = vld [vmem:[%s1032_s7] ss:$0 sm:$0xff]  ;;  %v460_v60 = vld [vmem:[#allocation2 + $0x90] sm:$0xff] }
 0x29b   :  { %v340_v62 = vmul.f32 %v338_v61, %v338_v61 }
 0x29d   :  { %v342_v63 = vsel %vm173_vm12, %v340_v62, 0.0  ;;  %v459_v62 = vld [vmem:[#allocation2 + $0x88] sm:$0xff] }
 0x29e   :  { %343 = vadd.xlane.f32.xlu0 %v342_v63  ;;  %v442_v63 = vld [vmem:[#allocation2] sm:$0xff] }
 0x2a8   :  { %v328_v1 = vpop.xlane.xlu1 %327 }
 0x2a9   :  { %v337_v3 = vmul.f32 %v335_v58, %v328_v1  ;;  %v458_v1 = vld [vmem:[#allocation2 + $0x80] sm:$0xff] }
 0x2ab   :  { %v339_v4 = vsub.f32 %v322_v25, %v337_v3  ;;  %v412_v3 = vld [vmem:[%s1034_s9] sm:$0x3] }
 0x2ad   :  { %v341_v48 = vmul.f32 %v339_v4, %v339_v4 }
 0x2af   :  { %v345_v5 = vsel %vm173_vm12, %v341_v48, 0.0 }
 0x2b0   :  { %346 = vadd.xlane.f32.xlu2 %v345_v5  ;;  %v414_v5 = vperm.slane %v412_v3, 0 }
 0x2c3   :  { %v541_v40 = vpop.f32.mrf.mxu2 }
 0x2d5   :  { %v544_v47 = vpop.f32.mrf.mxu2 }
 0x311   :  { %v344_v6 = vpop.xlane.xlu0 %343 }
 0x312   :  { %v348_v7 = vmul.f32 %v344_v6, %v335_v58  ;;  %v415_v6 = vperm.slane %v412_v3, 1 }
 0x314   :  { %v350_v8 = vadd.f32 1e-05, %v348_v7 }
 0x316   :  { %676 = vrsqrt.f32 %v350_v8  ;;  %vm358_vm3 = vweird.f32 %v350_v8 }
 0x31c   :  { %v677_v9 = vpop.eup %676 }
 0x31d   :  { %v353_v10 = vmul.f32 %v677_v9, %v350_v8  ;;  %vm359_vm2 = vweird.f32 %v677_v9 }
 0x31e   :  { %vm360_vm5 = vmor %vm358_vm3, %vm359_vm2 }
 0x31f   :  { %v354_v11 = vmul.f32 %v677_v9, %v353_v10 }
 0x321   :  { %v355_v12 = vmul.f32 0.5, %v354_v11 }
 0x323   :  { %v356_v13 = vsub.f32 1.5, %v355_v12  ;;  %v347_v14 = vpop.xlane.xlu2 %346 }
 0x324   :  { %v349_v15 = vmul.f32 %v347_v14, %v335_v58  ;;  %v461_v58 = vld [vmem:[#allocation2 + $0x98] sm:$0xff] }
 0x325   :  { %v357_v16 = vmul.f32 %v677_v9, %v356_v13  ;;  %582 = vmatpush.msra.mxu0 %v461_v58 }
 0x326   :  { %v351_v17 = vadd.f32 1e-05, %v349_v15 }
 0x327   :  { %v361_v19 = vsel %vm360_vm5, %v677_v9, %v357_v16  ;;  %583 = vmatpush.msra.mxu0 %v460_v60 }
 0x328   :  { %v372_v20 = vmul.f32 %v361_v19, %v338_v61  ;;  %678 = vrsqrt.f32 %v351_v17  ;;  %vm368_vm0 = vweird.f32 %v351_v17  ;;  %v443_v61 = vld [vmem:[#allocation2 + $0x8] sm:$0xff] }
 0x329   :  { %561 = vmatpush.msra.mxu3 %v443_v61  ;;  %584 = vmatpush.msra.mxu0 %v459_v62 }
 0x32a   :  { %v378_v22 = vmul.f32 %v645_v18, %v372_v20 }
 0x32b   :  { %562 = vmatpush.msra.mxu3 %v442_v63  ;;  %585 = vmatpush.msra.mxu0 %v458_v1 }
 0x32c   :  { %v989_v23 = vadd.f32 %v646_v21, %v378_v22 }
 0x32e   :  { %v679_v24 = vpop.eup %678  ;;  %400 = vrot.lane.b32.xlu2 %v989_v23, %s749_s24  ;;  %394 = vrot.lane.b32.xlu0 %v989_v23, %s746_s22 }
 0x32f   :  { %v363_v0 = vmul.f32 %v679_v24, %v351_v17  ;;  %388 = vrot.lane.b32.xlu1 %v989_v23, %s747_s2  ;;  %vm369_vm6 = vweird.f32 %v679_v24 }
 0x330   :  { %vm370_vm7 = vmor %vm368_vm0, %vm369_vm6 }
 0x331   :  { %v364_v25 = vmul.f32 %v679_v24, %v363_v0 }
 0x333   :  { %v365_v26 = vmul.f32 0.5, %v364_v25 }
 0x335   :  { %v366_v27 = vsub.f32 1.5, %v365_v26 }
 0x337   :  { %v367_v28 = vmul.f32 %v679_v24, %v366_v27 }
 0x339   :  { %v371_v29 = vsel %vm370_vm7, %v679_v24, %v367_v28 }
 0x33a   :  { %v373_v30 = vmul.f32 %v371_v29, %v339_v4 }
 0x33c   :  { %v379_v31 = vmul.f32 %v645_v18, %v373_v30 }
 0x33e   :  { %v997_v32 = vadd.f32 %v646_v21, %v379_v31 }
 0x340   :  { %402 = vrot.lane.b32.xlu2 %v997_v32, %s749_s24  ;;  %390 = vrot.lane.b32.xlu0 %v997_v32, %s747_s2  ;;  %s752_s2 = smov [#allocation5]  }
 0x341   :  { %396 = vrot.lane.b32.xlu1 %v997_v32, %s746_s22  ;;  %s605_s24 = sshll.u32 %s752_s2, 4  ;;  %s606_s24 = int_to_ptr.vmem [resolvable:$true] %s605_s24 }
 0x388   :  { %v401_v8 = vpop.permute.xlu2 %400 }
 0x39a   :  { %v403_v24 = vpop.permute.xlu2 %402 }
 0x3a0   :  { %v395_v4 = vpop.permute.xlu0 %394 }
 0x3a1   :  { %v389_v48 = vpop.permute.xlu1 %388 }
 0x3a2   :  { %v406_v7 = vsel %vm173_vm12, %v989_v23, %v389_v48 }
 0x3a3   :  { %v408_v9 = vsel %vm179_vm14, %v406_v7, %v395_v4 }
 0x3a4   :  { %v410_v10 = vsel %vm185_vm4, %v408_v9, %v401_v8 }
 0x3a5   :  { %v418_v11 = vsub.f32 %v410_v10, %v414_v5  ;;  %v419_v12 = vsub.f32 %v410_v10, %v415_v6 }
 0x3a7   :  { %v422_v13 = vmul.f32 1.75, %v418_v11  ;;  %v423_v14 = vmul.f32 1.75, %v419_v12 }
 0x3a9   :  { %v426_v15 = vmul.f32 %v422_v13, %v422_v13  ;;  %v427_v16 = vmul.f32 %v423_v14, %v423_v14 }
 0x3ab   :  { %v430_v17 = vsub.f32 0.0, %v426_v15  ;;  %v431_v18 = vsub.f32 0.0, %v427_v16 }
 0x3ad   :  { %v434_v19 = vmul.f32 1.442695, %v430_v17  ;;  %v436_v20 = vmul.f32 1.442695, %v431_v18 }
 0x3af   :  { %680 = vpow2.f32 %v434_v19 }
 0x3b0   :  { %682 = vpow2.f32 %v436_v20 }
 0x3b2   :  { %v391_v21 = vpop.permute.xlu0 %390 }
 0x3b3   :  { %v407_v22 = vsel %vm173_vm12, %v997_v32, %v391_v21  ;;  %v397_v23 = vpop.permute.xlu1 %396 }
 0x3b4   :  { %v409_v0 = vsel %vm179_vm14, %v407_v22, %v397_v23 }
 0x3b5   :  { %v681_v25 = vpop.eup %680  ;;  %v411_v26 = vsel %vm185_vm4, %v409_v0, %v403_v24 }
 0x3b6   :  { %v683_v27 = vpop.eup %682  ;;  %v420_v28 = vsub.f32 %v411_v26, %v414_v5  ;;  %v421_v29 = vsub.f32 %v411_v26, %v415_v6  ;;  %563 = vmatmul.f32.vlgmr.msra.gmra.mxu3 %v681_v25 }
 0x3b7   :  { %586 = vmatmul.f32.vlgmr.msra.gmra.mxu0 %v683_v27 }
 0x3b8   :  { %v424_v30 = vmul.f32 1.75, %v420_v28  ;;  %v425_v31 = vmul.f32 1.75, %v421_v29 }
 0x3ba   :  { %v428_v33 = vmul.f32 %v424_v30, %v424_v30  ;;  %v429_v34 = vmul.f32 %v425_v31, %v425_v31 }
 0x3bc   :  { %v432_v35 = vsub.f32 0.0, %v428_v33  ;;  %v433_v36 = vsub.f32 0.0, %v429_v34 }
 0x3be   :  { %v438_v37 = vmul.f32 1.442695, %v432_v35  ;;  %v440_v32 = vmul.f32 1.442695, %v433_v36 }
 0x3c0   :  { %684 = vpow2.f32 %v438_v37 }
 0x3c1   :  { %686 = vpow2.f32 %v440_v32 }
 0x3c6   :  { %v685_v38 = vpop.eup %684 }
 0x3c7   :  { %v687_v39 = vpop.eup %686  ;;  %566 = vmatmul.f32.gmra.mxu3 %v685_v38 }
 0x3c8   :  { %589 = vmatmul.f32.gmra.mxu0 %v687_v39 }
 0x434   :  { %v587_v44 = vpop.f32.mrf.mxu0 }
 0x439   :  { %v564_v41 = vpop.f32.mrf.mxu3 }
 0x43a   :  { %v565_v42 = vadd.f32 %v564_v41, %v541_v40 }
 0x43c   :  { %v588_v45 = vadd.f32 %v587_v44, %v565_v42 }
 0x43e   :  { %v597_v46 = vadd.f32 %v647_v43, %v588_v45 }
 0x440   :  { %599 = vst [vmem:[#allocation5] sm:$0xff] %v597_v46 }
 0x445   :  { %v590_v51 = vpop.f32.mrf.mxu0 }
 0x44a   :  { %v567_v49 = vpop.f32.mrf.mxu3 }
 0x44b   :  { %v568_v50 = vadd.f32 %v567_v49, %v544_v47 }
 0x44d   :  { %v591_v52 = vadd.f32 %v590_v51, %v568_v50 }
 0x44f   :  { %v598_v53 = vadd.f32 %v647_v43, %v591_v52 }
 0x451   :  { %600 = vst [vmem:[#allocation5 + $0x8] sm:$0xff] %v598_v53 }
 0x452   :  { %613 = dma.vmem_to_hbm [thread:$0]  %s606_s24, 256, %s608_s27, [#allocation4], %s741_s30, %s741_s30, %s742_s14  }
 0x453   :  { %738 = dma.done.wait [#allocation4], 256  }
 0x454   :  { %739 = vsyncadd [#allocation4], 4294967040 }
 0x455   :  { %618 = vsyncpa [#allocation3], 1 }
 0x456   :  { %619 = vsyncpa [#allocation4], 1 }

// kernel: tpu_custom_call.1
= control target key start
LH: loop header
LB: loop body
LE: loop exit
PB: predicated region body
PF: predicated region fallthrough
CT: control target
= control target key end

     0   :  { %18 = vsyncpa [#allocation3], 0  ;;  %s1025_s0 = inlined_call_operand.vmem [shape: f32[16,16], index: 0, kind: input, shape index: {}]   ;;  %s1026_s1 = inlined_call_operand.vmem [shape: f32[1,16], index: 1, kind: input, shape index: {}]   ;;  %s1027_s2 = inlined_call_operand.vmem [shape: f32[1,16], index: 2, kind: input, shape index: {}]   ;;  %s1028_s3 = inlined_call_operand.vmem [shape: f32[1,128], index: 3, kind: input, shape index: {}]   ;;  %s1029_s4 = inlined_call_operand.vmem [shape: f32[128,32], index: 4, kind: input, shape index: {}]   ;;  %s1030_s5 = inlined_call_operand.vmem [shape: f32[16,32], index: 5, kind: input, shape index: {}]   ;;  %s1031_s6 = inlined_call_operand.vmem [shape: f32[1,32], index: 6, kind: input, shape index: {}]   ;;  %s1032_s7 = inlined_call_operand.vmem [shape: f32[1,32], index: 7, kind: input, shape index: {}]   ;;  %s1033_s8 = inlined_call_operand.vmem [shape: f32[1,32], index: 8, kind: input, shape index: {}]   ;;  %s1034_s9 = inlined_call_operand.vmem [shape: f32[1,256], index: 9, kind: input, shape index: {}]   ;;  %s1035_s10 = inlined_call_operand.hbm [shape: f32[256,128], index: 10, kind: input, shape index: {}]   ;;  %s1036_s11 = inlined_call_operand.vmem [shape: f32[32,128], index: 11, kind: input, shape index: {}]   ;;  %s1037_s12 = inlined_call_operand.vmem [shape: f32[1,128], index: 12, kind: input, shape index: {}]   ;;  %s1038_s13 = inlined_call_operand.hbm [shape: f32[16,128], index: 13, kind: output, shape index: {}]  }
   0x1   :  { %19 = vsyncpa [#allocation4], 0  ;;  %s44_s27 = sshll.u32 %s1035_s10, 4  ;;  %s740_s28 = smov [#allocation2]   ;;  %s45_s27 = int_to_ptr.hbm [resolvable:$true] %s44_s27 }
   0x2   :  { %s46_s29 = sshll.u32 %s740_s28, 4  ;;  %s741_s30 = smov 128   ;;  %s47_s29 = int_to_ptr.vmem [resolvable:$true] %s46_s29 }
   0x3   :  { %s742_s14 = smov 8  }
   0x4   :  { %52 = dma.hbm_to_vmem [thread:$0]  %s45_s27, 4096, %s47_s29, [#allocation3], %s741_s30, %s741_s30, %s742_s14  }
   0x5   :  { %736 = dma.done.wait [#allocation3], 4096  }
   0x6   :  { %737 = vsyncadd [#allocation3], 4294963200  ;;  %vm63_vm0 = vcmask 130048   ;;  %v832_v0 = vld [vmem:[%s1025_s0] sm:$0xff]  ;;  %v839_v2 = vld [vmem:[%s1025_s0 + $0x8] sm:$0xff]  ;;  %v743_v4 = vmov 16.0  }
   0x7   :  { %v64_v1 = vsel %vm63_vm0, %v832_v0, 0.0  ;;  %v67_v3 = vsel %vm63_vm0, %v839_v2, 0.0  ;;  %648 = vrcp.f32 %v743_v4  ;;  %v641_v35 = vld [vmem:[%s1026_s1] ss:$0 sm:$0xff]  ;;  %s744_s21 = smov 48   ;;  %s745_s1 = smov 16  }
   0x8   :  { %65 = vadd.xlane.f32.xlu0 %v64_v1  ;;  %v642_v38 = vld [vmem:[%s1027_s2] ss:$0 sm:$0xff]  ;;  %s746_s22 = smov 64   ;;  %s747_s2 = smov 32   ;;  %v620_v49 = vmul.f32 -1.442695, %v832_v0 }
   0x9   :  { %s748_s23 = smov 80   ;;  %s749_s24 = smov 96   ;;  %v222_v50 = vld [vmem:[%s1029_s4 + $0x78] sm:$0xff]  ;;  %v221_v51 = vld [vmem:[%s1029_s4 + $0x70] sm:$0xff]  ;;  %v220_v53 = vld [vmem:[%s1029_s4 + $0x68] sm:$0xff]  ;;  %vm173_vm12 = vcmask 261120  }
   0xa   :  { %s750_s25 = smov 112   ;;  %294 = vmatpush.msra.mxu1 %v222_v50  ;;  %v621_v55 = vmul.f32 -1.442695, %v839_v2  ;;  %v219_v56 = vld [vmem:[%s1029_s4 + $0x60] sm:$0xff]  ;;  %v218_v57 = vld [vmem:[%s1029_s4 + $0x58] sm:$0xff]  ;;  %v217_v58 = vld [vmem:[%s1029_s4 + $0x50] sm:$0xff] }
   0xb   :  { %v216_v59 = vld [vmem:[%s1029_s4 + $0x48] sm:$0xff]  ;;  %v215_v62 = vld [vmem:[%s1029_s4 + $0x40] sm:$0xff]  ;;  %vm176_vm13 = vcmask 392192   ;;  %vm179_vm14 = vcmask 523264   ;;  %vm182_vm15 = vcmask 654336   ;;  %s607_s27 = sshll.u32 %s1038_s13, 4  ;;  %s608_s27 = int_to_ptr.hbm [resolvable:$true] %s607_s27 }
   0xc   :  { %295 = vmatpush.msra.mxu1 %v221_v51 }
   0xd   :  { %v649_v5 = vpop.eup %648 }
   0xe   :  { %v71_v6 = vmul.f32 16.0, %v649_v5  ;;  %vm75_vm1 = vweird.f32 %v649_v5  ;;  %296 = vmatpush.msra.mxu1 %v220_v53 }
  0x10   :  { %68 = vadd.xlane.f32.xlu0 %v67_v3  ;;  %v72_v7 = vsub.f32 1.0, %v71_v6  ;;  %297 = vmatpush.msra.mxu1 %v219_v56  ;;  %v214_v3 = vld [vmem:[%s1029_s4 + $0x38] sm:$0xff] }
  0x12   :  { %v73_v8 = vmul.f32 %v649_v5, %v72_v7  ;;  %298 = vmatpush.msra.mxu1 %v218_v57 }
  0x14   :  { %v74_v9 = vadd.f32 %v649_v5, %v73_v8  ;;  %299 = vmatpush.msra.mxu1 %v217_v58 }
  0x16   :  { %v76_v10 = vsel %vm75_vm1, %v649_v5, %v74_v9  ;;  %300 = vmatpush.msra.mxu1 %v216_v59  ;;  %v213_v5 = vld [vmem:[%s1029_s4 + $0x30] sm:$0xff] }
  0x18   :  { %301 = vmatpush.msra.mxu1 %v215_v62 }
  0x1a   :  { %302 = vmatpush.msra.mxu1 %v214_v3 }
  0x1c   :  { %303 = vmatpush.msra.mxu1 %v213_v5 }
  0x7b   :  { %v66_v11 = vpop.xlane.xlu0 %65 }
  0x7c   :  { %v77_v12 = vmul.f32 %v76_v10, %v66_v11 }
  0x7e   :  { %v79_v13 = vsub.f32 %v832_v0, %v77_v12 }
  0x80   :  { %v81_v14 = vmul.f32 %v79_v13, %v79_v13 }
  0x82   :  { %v83_v15 = vsel %vm63_vm0, %v81_v14, 0.0  ;;  %v264_v14 = vld [vmem:[%s1030_s5 + $0x8] sm:$0xff] }
  0x83   :  { %84 = vadd.xlane.f32.xlu1 %v83_v15  ;;  %v69_v16 = vpop.xlane.xlu0 %68  ;;  %v211_v15 = vld [vmem:[%s1029_s4 + $0x20] sm:$0xff]  ;;  %285 = vmatpush.msra.mxu2 %v264_v14 }
  0x84   :  { %v78_v17 = vmul.f32 %v76_v10, %v69_v16 }
  0x86   :  { %v80_v18 = vsub.f32 %v839_v2, %v78_v17 }
  0x88   :  { %v82_v19 = vmul.f32 %v80_v18, %v80_v18 }
  0x8a   :  { %v86_v20 = vsel %vm63_vm0, %v82_v19, 0.0  ;;  %v210_v19 = vld [vmem:[%s1029_s4 + $0x18] sm:$0xff] }
  0x8b   :  { %87 = vadd.xlane.f32.xlu1 %v86_v20 }
  0xf6   :  { %v85_v21 = vpop.xlane.xlu1 %84 }
  0xf7   :  { %v89_v22 = vmul.f32 %v85_v21, %v76_v10  ;;  %v209_v21 = vld [vmem:[%s1029_s4 + $0x10] sm:$0xff] }
  0xf9   :  { %v91_v23 = vadd.f32 1e-05, %v89_v22  ;;  %v208_v22 = vld [vmem:[%s1029_s4 + $0x8] sm:$0xff] }
  0xfb   :  { %650 = vrsqrt.f32 %v91_v23  ;;  %vm99_vm3 = vweird.f32 %v91_v23 }
  0xfe   :  { %v88_v24 = vpop.xlane.xlu1 %87 }
  0xff   :  { %v90_v25 = vmul.f32 %v88_v24, %v76_v10  ;;  %v212_v10 = vld [vmem:[%s1029_s4 + $0x28] sm:$0xff] }
 0x100   :  { %304 = vmatpush.msra.mxu1 %v212_v10  ;;  %v517_v10 = vld [vmem:[%s1036_s11 + $0x18] sm:$0xff] }
 0x101   :  { %v651_v26 = vpop.eup %650  ;;  %v92_v27 = vadd.f32 1e-05, %v90_v25 }
 0x102   :  { %v94_v28 = vmul.f32 %v651_v26, %v91_v23  ;;  %vm100_vm2 = vweird.f32 %v651_v26  ;;  %305 = vmatpush.msra.mxu1 %v211_v15  ;;  %v515_v15 = vld [vmem:[%s1036_s11 + $0x8] sm:$0xff] }
 0x103   :  { %652 = vrsqrt.f32 %v92_v27  ;;  %vm101_vm4 = vmor %vm99_vm3, %vm100_vm2  ;;  %vm109_vm6 = vweird.f32 %v92_v27 }
 0x104   :  { %v95_v29 = vmul.f32 %v651_v26, %v94_v28  ;;  %654 = vpow2.f32 %v620_v49  ;;  %306 = vmatpush.msra.mxu1 %v210_v19 }
 0x106   :  { %v96_v30 = vmul.f32 0.5, %v95_v29  ;;  %307 = vmatpush.msra.mxu1 %v209_v21 }
 0x108   :  { %v97_v31 = vsub.f32 1.5, %v96_v30  ;;  %308 = vmatpush.msra.mxu1 %v208_v22 }
 0x109   :  { %v653_v32 = vpop.eup %652 }
 0x10a   :  { %v98_v33 = vmul.f32 %v651_v26, %v97_v31  ;;  %v104_v34 = vmul.f32 %v653_v32, %v92_v27  ;;  %vm110_vm5 = vweird.f32 %v653_v32  ;;  %v655_v52 = vpop.eup %654 }
 0x10b   :  { %vm111_vm7 = vmor %vm109_vm6, %vm110_vm5  ;;  %v229_v54 = vadd.f32 1.0, %v655_v52  ;;  %vm188_vm6 = vcmask 916480  }
 0x10c   :  { %v102_v36 = vsel %vm101_vm4, %v651_v26, %v98_v33  ;;  %v105_v37 = vmul.f32 %v653_v32, %v104_v34  ;;  %vm185_vm4 = vcmask 785408  }
 0x10d   :  { %v113_v39 = vmul.f32 %v102_v36, %v79_v13  ;;  %656 = vrcp.f32 %v229_v54  ;;  %v242_v8 = vand.u32 2147483648, %v229_v54  ;;  %vm236_vm8 = vweird.f32 %v229_v54 }
 0x10e   :  { %v106_v40 = vmul.f32 0.5, %v105_v37  ;;  %658 = vpow2.f32 %v621_v55  ;;  %v240_v12 = vand.u32 2147483647, %v229_v54 }
 0x10f   :  { %v119_v41 = vmul.f32 %v641_v35, %v113_v39  ;;  %v243_v13 = vor.u32 1.1754944e-38, %v242_v8 }
 0x110   :  { %v107_v42 = vsub.f32 1.5, %v106_v40  ;;  %vm241_vm11 = vcmp.eq.f32.partialorder %v240_v12, 8.507059e+37  ;;  %v516_v12 = vld [vmem:[%s1036_s11 + $0x10] sm:$0xff] }
 0x111   :  { %v853_v43 = vadd.f32 %v642_v38, %v119_v41  ;;  %v643_v41 = vld [vmem:[%s1028_s3] ss:$0 sm:$0xff] }
 0x112   :  { %v108_v44 = vmul.f32 %v653_v32, %v107_v42 }
 0x113   :  { %141 = vrot.lane.b32.xlu0 %v853_v43, %s744_s21  ;;  %129 = vrot.lane.b32.xlu2 %v853_v43, %s745_s1  ;;  %v657_v60 = vpop.eup %656 }
 0x114   :  { %v112_v45 = vsel %vm111_vm7, %v653_v32, %v108_v44  ;;  %147 = vrot.lane.b32.xlu1 %v853_v43, %s746_s22  ;;  %v232_v63 = vmul.f32 %v657_v60, %v229_v54  ;;  %v659_v1 = vpop.eup %658  ;;  %vm237_vm9 = vweird.f32 %v657_v60 }
 0x115   :  { %v114_v46 = vmul.f32 %v112_v45, %v80_v18  ;;  %v230_v7 = vadd.f32 1.0, %v659_v1  ;;  %vm238_vm10 = vmor %vm236_vm8, %vm237_vm9  ;;  %v263_v18 = vld [vmem:[%s1030_s5] sm:$0xff] }
 0x116   :  { %v233_v4 = vsub.f32 1.0, %v232_v63  ;;  %286 = vmatpush.msra.mxu2 %v263_v18 }
 0x117   :  { %v120_v47 = vmul.f32 %v641_v35, %v114_v46  ;;  %660 = vrcp.f32 %v230_v7  ;;  %v257_v34 = vand.u32 2147483648, %v230_v7  ;;  %vm251_vm1 = vweird.f32 %v230_v7 }
 0x118   :  { %v234_v6 = vmul.f32 %v657_v60, %v233_v4  ;;  %v255_v37 = vand.u32 2147483647, %v230_v7  ;;  %536 = vmatpush.msrb.mxu2 %v517_v10 }
 0x119   :  { %v859_v48 = vadd.f32 %v642_v38, %v120_v47  ;;  %v258_v38 = vor.u32 1.1754944e-38, %v257_v34 }
 0x11a   :  { %v235_v11 = vadd.f32 %v657_v60, %v234_v6  ;;  %vm256_vm5 = vcmp.eq.f32.partialorder %v255_v37, 8.507059e+37  ;;  %537 = vmatpush.msrb.mxu2 %v516_v12 }
 0x11b   :  { %135 = vrot.lane.b32.xlu2 %v853_v43, %s747_s2  ;;  %131 = vrot.lane.b32.xlu0 %v859_v48, %s745_s1 }
 0x11c   :  { %143 = vrot.lane.b32.xlu1 %v859_v48, %s744_s21  ;;  %v239_v16 = vsel %vm238_vm10, %v657_v60, %v235_v11  ;;  %538 = vmatpush.msrb.mxu2 %v515_v15 }
 0x11d   :  { %v244_v17 = vsel %vm241_vm11, %v243_v13, %v239_v16  ;;  %v661_v24 = vpop.eup %660  ;;  %v644_v13 = vld [vmem:[%s1031_s6] ss:$0 sm:$0xff] }
 0x11e   :  { %v261_v20 = vmul.f32 %v244_v17, %v832_v0  ;;  %v207_v0 = vld [vmem:[%s1029_s4] sm:$0xff]  ;;  %v247_v25 = vmul.f32 %v661_v24, %v230_v7  ;;  %vm252_vm2 = vweird.f32 %v661_v24 }
 0x11f   :  { %309 = vmatpush.msra.mxu1 %v207_v0  ;;  %vm253_vm3 = vmor %vm251_vm1, %vm252_vm2  ;;  %v514_v17 = vld [vmem:[%s1036_s11] sm:$0xff] }
 0x120   :  { %622 = vmatmul.msk.f32.vlgmr.msra.gmra.mxu2 %vm63_vm0, %v261_v20  ;;  %v248_v26 = vsub.f32 1.0, %v247_v25 }
 0x121   :  { %539 = vmatpush.msrb.mxu2 %v514_v17 }
 0x122   :  { %v249_v31 = vmul.f32 %v661_v24, %v248_v26 }
 0x123   :  { %153 = vrot.lane.b32.xlu2 %v853_v43, %s748_s23  ;;  %149 = vrot.lane.b32.xlu0 %v859_v48, %s746_s22 }
 0x124   :  { %161 = vrot.lane.b32.xlu1 %v859_v48, %s749_s24  ;;  %v250_v36 = vadd.f32 %v661_v24, %v249_v31 }
 0x126   :  { %v254_v39 = vsel %vm253_vm3, %v661_v24, %v250_v36 }
 0x127   :  { %v259_v42 = vsel %vm256_vm5, %v258_v38, %v254_v39 }
 0x12b   :  { %159 = vrot.lane.b32.xlu2 %v853_v43, %s749_s24  ;;  %167 = vrot.lane.b32.xlu0 %v859_v48, %s750_s25 }
 0x133   :  { %165 = vrot.lane.b32.xlu2 %v853_v43, %s750_s25 }
 0x13b   :  { %137 = vrot.lane.b32.xlu2 %v859_v48, %s747_s2 }
 0x143   :  { %155 = vrot.lane.b32.xlu2 %v859_v48, %s748_s23 }
 0x16d   :  { %v130_v61 = vpop.permute.xlu2 %129 }
 0x16e   :  { %v171_v27 = vsel %vm63_vm0, %v853_v43, %v130_v61  ;;  %v262_v43 = vmul.f32 %v259_v42, %v839_v2 }
 0x170   :  { %623 = vmatmul.msk.f32.gmra.mxu2 %vm63_vm0, %v262_v43 }
 0x175   :  { %v136_v9 = vpop.permute.xlu2 %135 }
 0x176   :  { %v174_v28 = vsel %vm173_vm12, %v171_v27, %v136_v9 }
 0x17d   :  { %v154_v23 = vpop.permute.xlu2 %153 }
 0x185   :  { %v160_v29 = vpop.permute.xlu2 %159  ;;  %v142_v30 = vpop.permute.xlu0 %141 }
 0x186   :  { %v148_v32 = vpop.permute.xlu1 %147  ;;  %v177_v33 = vsel %vm176_vm13, %v174_v28, %v142_v30 }
 0x187   :  { %v180_v35 = vsel %vm179_vm14, %v177_v33, %v148_v32 }
 0x188   :  { %v183_v40 = vsel %vm182_vm15, %v180_v35, %v154_v23 }
 0x189   :  { %v186_v45 = vsel %vm185_vm4, %v183_v40, %v160_v29 }
 0x18d   :  { %v166_v44 = vpop.permute.xlu2 %165  ;;  %v132_v46 = vpop.permute.xlu0 %131 }
 0x18e   :  { %v189_v47 = vsel %vm188_vm6, %v186_v45, %v166_v44  ;;  %v144_v52 = vpop.permute.xlu1 %143  ;;  %v172_v56 = vsel %vm63_vm0, %v859_v48, %v132_v46 }
 0x18f   :  { %v195_v49 = vsub.f32 %v189_v47, %v643_v41 }
 0x191   :  { %v197_v50 = vmul.f32 1.75, %v195_v49 }
 0x193   :  { %v199_v51 = vmul.f32 %v197_v50, %v197_v50 }
 0x195   :  { %v201_v53 = vsub.f32 0.0, %v199_v51  ;;  %v138_v54 = vpop.permute.xlu2 %137  ;;  %v150_v55 = vpop.permute.xlu0 %149 }
 0x196   :  { %v175_v2 = vsel %vm173_vm12, %v172_v56, %v138_v54  ;;  %v162_v61 = vpop.permute.xlu1 %161 }
 0x197   :  { %v203_v57 = vmul.f32 1.442695, %v201_v53  ;;  %v178_v58 = vsel %vm176_vm13, %v175_v2, %v144_v52  ;;  %v751_v53 = vmov 32.0  }
 0x198   :  { %v181_v59 = vsel %vm179_vm14, %v178_v58, %v150_v55 }
 0x199   :  { %662 = vpow2.f32 %v203_v57 }
 0x19d   :  { %v156_v60 = vpop.permute.xlu2 %155  ;;  %v168_v3 = vpop.permute.xlu0 %167 }
 0x19e   :  { %v184_v62 = vsel %vm182_vm15, %v181_v59, %v156_v60 }
 0x19f   :  { %v663_v63 = vpop.eup %662  ;;  %v187_v1 = vsel %vm185_vm4, %v184_v62, %v162_v61 }
 0x1a0   :  { %v190_v4 = vsel %vm188_vm6, %v187_v1, %v168_v3  ;;  %310 = vmatmul.f32.vlgmr.msra.gmra.mxu1 %v663_v63 }
 0x1a1   :  { %v196_v48 = vsub.f32 %v190_v4, %v643_v41 }
 0x1a3   :  { %v198_v5 = vmul.f32 1.75, %v196_v48  ;;  %v288_v11 = vpop.f32.mrf.mxu2 }
 0x1a5   :  { %v200_v6 = vmul.f32 %v198_v5, %v198_v5 }
 0x1a7   :  { %v202_v7 = vsub.f32 0.0, %v200_v6 }
 0x1a9   :  { %v205_v8 = vmul.f32 1.442695, %v202_v7 }
 0x1ab   :  { %664 = vpow2.f32 %v205_v8 }
 0x1b1   :  { %v665_v9 = vpop.eup %664 }
 0x1b2   :  { %313 = vmatmul.f32.gmra.mxu1 %v665_v9 }
 0x1f3   :  { %v291_v23 = vpop.f32.mrf.mxu2 }
 0x21d   :  { %v311_v14 = vpop.f32.mrf.mxu1 }
 0x21e   :  { %v312_v16 = vadd.f32 %v311_v14, %v288_v11 }
 0x220   :  { %v971_v18 = vadd.f32 %v644_v13, %v312_v16 }
 0x222   :  { %v624_v19 = vmul.f32 -1.442695, %v971_v18  ;;  %v323_v20 = vsel %vm173_vm12, %v971_v18, 0.0 }
 0x223   :  { %324 = vadd.xlane.f32.xlu2 %v323_v20 }
 0x224   :  { %666 = vpow2.f32 %v624_v19 }
 0x22a   :  { %v667_v21 = vpop.eup %666 }
 0x22b   :  { %v480_v22 = vadd.f32 1.0, %v667_v21  ;;  %v646_v21 = vld [vmem:[%s1033_s8] ss:$0 sm:$0xff] }
 0x22d   :  { %668 = vrcp.f32 %v480_v22  ;;  %v493_v31 = vand.u32 2147483648, %v480_v22  ;;  %v491_v33 = vand.u32 2147483647, %v480_v22  ;;  %vm487_vm7 = vweird.f32 %v480_v22 }
 0x22f   :  { %v314_v24 = vpop.f32.mrf.mxu1  ;;  %v494_v35 = vor.u32 1.1754944e-38, %v493_v31  ;;  %vm492_vm9 = vcmp.eq.f32.partialorder %v491_v33, 8.507059e+37  ;;  %v457_v33 = vld [vmem:[#allocation2 + $0x78] sm:$0xff] }
 0x230   :  { %v315_v0 = vadd.f32 %v314_v24, %v291_v23  ;;  %547 = vmatpush.msra.mxu3 %v457_v33 }
 0x232   :  { %v322_v25 = vadd.f32 %v644_v13, %v315_v0 }
 0x233   :  { %v669_v26 = vpop.eup %668 }
 0x234   :  { %v625_v27 = vmul.f32 -1.442695, %v322_v25  ;;  %v326_v28 = vsel %vm173_vm12, %v322_v25, 0.0  ;;  %v483_v29 = vmul.f32 %v669_v26, %v480_v22  ;;  %vm488_vm0 = vweird.f32 %v669_v26 }
 0x235   :  { %327 = vadd.xlane.f32.xlu1 %v326_v28  ;;  %vm489_vm8 = vmor %vm487_vm7, %vm488_vm0 }
 0x236   :  { %670 = vpow2.f32 %v625_v27  ;;  %v484_v30 = vsub.f32 1.0, %v483_v29 }
 0x238   :  { %v485_v32 = vmul.f32 %v669_v26, %v484_v30 }
 0x23a   :  { %v486_v34 = vadd.f32 %v669_v26, %v485_v32 }
 0x23c   :  { %v671_v36 = vpop.eup %670  ;;  %v490_v37 = vsel %vm489_vm8, %v669_v26, %v486_v34  ;;  %v473_v34 = vld [vmem:[#allocation2 + $0xf8] sm:$0xff] }
 0x23d   :  { %v481_v38 = vadd.f32 1.0, %v671_v36  ;;  %v495_v39 = vsel %vm492_vm9, %v494_v35, %v490_v37  ;;  %v456_v35 = vld [vmem:[#allocation2 + $0x70] sm:$0xff]  ;;  %570 = vmatpush.msra.mxu0 %v473_v34  ;;  %v455_v37 = vld [vmem:[#allocation2 + $0x68] sm:$0xff] }
 0x23e   :  { %v512_v40 = vmul.f32 %v495_v39, %v971_v18  ;;  %v472_v36 = vld [vmem:[#allocation2 + $0xf0] sm:$0xff]  ;;  %548 = vmatpush.msra.mxu3 %v456_v35  ;;  %v454_v39 = vld [vmem:[#allocation2 + $0x60] sm:$0xff] }
 0x23f   :  { %672 = vrcp.f32 %v481_v38  ;;  %v508_v44 = vand.u32 2147483648, %v481_v38  ;;  %v506_v46 = vand.u32 2147483647, %v481_v38  ;;  %vm502_vm11 = vweird.f32 %v481_v38  ;;  %571 = vmatpush.msra.mxu0 %v472_v36 }
 0x240   :  { %626 = vmatmul.msk.f32.vlgmr.msrb.gmra.mxu2 %vm173_vm12, %v512_v40  ;;  %674 = vrcp.f32 %v751_v53  ;;  %549 = vmatpush.msra.mxu3 %v455_v37  ;;  %v470_v40 = vld [vmem:[#allocation2 + $0xe0] sm:$0xff]  ;;  %v464_v53 = vld [vmem:[#allocation2 + $0xb0] sm:$0xff] }
 0x241   :  { %v509_v49 = vor.u32 1.1754944e-38, %v508_v44  ;;  %vm507_vm15 = vcmp.eq.f32.partialorder %v506_v46, 8.507059e+37  ;;  %v468_v44 = vld [vmem:[#allocation2 + $0xd0] sm:$0xff]  ;;  %v467_v46 = vld [vmem:[#allocation2 + $0xc8] sm:$0xff] }
 0x242   :  { %550 = vmatpush.msra.mxu3 %v454_v39 }
 0x245   :  { %v673_v41 = vpop.eup %672 }
 0x246   :  { %v498_v42 = vmul.f32 %v673_v41, %v481_v38  ;;  %vm503_vm10 = vweird.f32 %v673_v41  ;;  %v675_v54 = vpop.eup %674  ;;  %v471_v38 = vld [vmem:[#allocation2 + $0xe8] sm:$0xff] }
 0x247   :  { %vm504_vm13 = vmor %vm502_vm11, %vm503_vm10  ;;  %v330_v55 = vmul.f32 32.0, %v675_v54  ;;  %vm334_vm1 = vweird.f32 %v675_v54  ;;  %572 = vmatpush.msra.mxu0 %v471_v38 }
 0x248   :  { %v499_v43 = vsub.f32 1.0, %v498_v42  ;;  %v469_v42 = vld [vmem:[#allocation2 + $0xd8] sm:$0xff] }
 0x249   :  { %v331_v56 = vsub.f32 1.0, %v330_v55  ;;  %573 = vmatpush.msra.mxu0 %v470_v40  ;;  %v463_v55 = vld [vmem:[#allocation2 + $0xa8] sm:$0xff] }
 0x24a   :  { %v500_v45 = vmul.f32 %v673_v41, %v499_v43  ;;  %v452_v43 = vld [vmem:[#allocation2 + $0x50] sm:$0xff] }
 0x24b   :  { %v332_v57 = vmul.f32 %v675_v54, %v331_v56  ;;  %574 = vmatpush.msra.mxu0 %v469_v42  ;;  %v446_v56 = vld [vmem:[#allocation2 + $0x20] sm:$0xff] }
 0x24c   :  { %v501_v47 = vadd.f32 %v673_v41, %v500_v45  ;;  %v451_v45 = vld [vmem:[#allocation2 + $0x48] sm:$0xff] }
 0x24d   :  { %v333_v2 = vadd.f32 %v675_v54, %v332_v57  ;;  %575 = vmatpush.msra.mxu0 %v468_v44  ;;  %v462_v57 = vld [vmem:[#allocation2 + $0xa0] sm:$0xff] }
 0x24e   :  { %v505_v50 = vsel %vm504_vm13, %v673_v41, %v501_v47  ;;  %v453_v41 = vld [vmem:[#allocation2 + $0x58] sm:$0xff]  ;;  %v450_v47 = vld [vmem:[#allocation2 + $0x40] sm:$0xff] }
 0x24f   :  { %v510_v51 = vsel %vm507_vm15, %v509_v49, %v505_v50  ;;  %v335_v58 = vsel %vm334_vm1, %v675_v54, %v333_v2  ;;  %551 = vmatpush.msra.mxu3 %v453_v41  ;;  %576 = vmatpush.msra.mxu0 %v467_v46  ;;  %v466_v49 = vld [vmem:[#allocation2 + $0xc0] sm:$0xff]  ;;  %v449_v50 = vld [vmem:[#allocation2 + $0x38] sm:$0xff]  ;;  %v447_v54 = vld [vmem:[#allocation2 + $0x28] sm:$0xff] }
 0x250   :  { %v513_v52 = vmul.f32 %v510_v51, %v322_v25  ;;  %v465_v51 = vld [vmem:[#allocation2 + $0xb8] sm:$0xff] }
 0x251   :  { %552 = vmatpush.msra.mxu3 %v452_v43  ;;  %577 = vmatpush.msra.mxu0 %v466_v49  ;;  %v445_v2 = vld [vmem:[#allocation2 + $0x18] sm:$0xff]  ;;  %v647_v43 = vld [vmem:[%s1037_s12] ss:$0 sm:$0xff] }
 0x252   :  { %627 = vmatmul.msk.f32.gmra.mxu2 %vm173_vm12, %v513_v52  ;;  %v448_v52 = vld [vmem:[#allocation2 + $0x30] sm:$0xff] }
 0x253   :  { %553 = vmatpush.msra.mxu3 %v451_v45  ;;  %578 = vmatpush.msra.mxu0 %v465_v51 }
 0x255   :  { %554 = vmatpush.msra.mxu3 %v450_v47  ;;  %579 = vmatpush.msra.mxu0 %v464_v53 }
 0x257   :  { %555 = vmatpush.msra.mxu3 %v449_v50  ;;  %580 = vmatpush.msra.mxu0 %v463_v55 }
 0x259   :  { %556 = vmatpush.msra.mxu3 %v448_v52  ;;  %581 = vmatpush.msra.mxu0 %v462_v57 }
 0x25b   :  { %557 = vmatpush.msra.mxu3 %v447_v54 }
 0x25d   :  { %558 = vmatpush.msra.mxu3 %v446_v56 }
 0x25f   :  { %559 = vmatpush.msra.mxu3 %v445_v2 }
 0x296   :  { %v325_v59 = vpop.xlane.xlu2 %324 }
 0x297   :  { %v336_v60 = vmul.f32 %v335_v58, %v325_v59  ;;  %v444_v59 = vld [vmem:[#allocation2 + $0x10] sm:$0xff] }
 0x298   :  { %560 = vmatpush.msra.mxu3 %v444_v59 }
 0x299   :  { %v338_v61 = vsub.f32 %v971_v18, %v336_v60  ;;  %v645_v18 = vld [vmem:[%s1032_s7] ss:$0 sm:$0xff]  ;;  %v460_v60 = vld [vmem:[#allocation2 + $0x90] sm:$0xff] }
 0x29b   :  { %v340_v62 = vmul.f32 %v338_v61, %v338_v61 }
 0x29d   :  { %v342_v63 = vsel %vm173_vm12, %v340_v62, 0.0  ;;  %v459_v62 = vld [vmem:[#allocation2 + $0x88] sm:$0xff] }
 0x29e   :  { %343 = vadd.xlane.f32.xlu0 %v342_v63  ;;  %v442_v63 = vld [vmem:[#allocation2] sm:$0xff] }
 0x2a8   :  { %v328_v1 = vpop.xlane.xlu1 %327 }
 0x2a9   :  { %v337_v3 = vmul.f32 %v335_v58, %v328_v1  ;;  %v458_v1 = vld [vmem:[#allocation2 + $0x80] sm:$0xff] }
 0x2ab   :  { %v339_v4 = vsub.f32 %v322_v25, %v337_v3  ;;  %v412_v3 = vld [vmem:[%s1034_s9] sm:$0x3] }
 0x2ad   :  { %v341_v48 = vmul.f32 %v339_v4, %v339_v4 }
 0x2af   :  { %v345_v5 = vsel %vm173_vm12, %v341_v48, 0.0 }
 0x2b0   :  { %346 = vadd.xlane.f32.xlu2 %v345_v5  ;;  %v414_v5 = vperm.slane %v412_v3, 0 }
 0x2c3   :  { %v541_v40 = vpop.f32.mrf.mxu2 }
 0x2d5   :  { %v544_v47 = vpop.f32.mrf.mxu2 }
 0x311   :  { %v344_v6 = vpop.xlane.xlu0 %343 }
 0x312   :  { %v348_v7 = vmul.f32 %v344_v6, %v335_v58  ;;  %v415_v6 = vperm.slane %v412_v3, 1 }
 0x314   :  { %v350_v8 = vadd.f32 1e-05, %v348_v7 }
 0x316   :  { %676 = vrsqrt.f32 %v350_v8  ;;  %vm358_vm3 = vweird.f32 %v350_v8 }
 0x31c   :  { %v677_v9 = vpop.eup %676 }
 0x31d   :  { %v353_v10 = vmul.f32 %v677_v9, %v350_v8  ;;  %vm359_vm2 = vweird.f32 %v677_v9 }
 0x31e   :  { %vm360_vm5 = vmor %vm358_vm3, %vm359_vm2 }
 0x31f   :  { %v354_v11 = vmul.f32 %v677_v9, %v353_v10 }
 0x321   :  { %v355_v12 = vmul.f32 0.5, %v354_v11 }
 0x323   :  { %v356_v13 = vsub.f32 1.5, %v355_v12  ;;  %v347_v14 = vpop.xlane.xlu2 %346 }
 0x324   :  { %v349_v15 = vmul.f32 %v347_v14, %v335_v58  ;;  %v461_v58 = vld [vmem:[#allocation2 + $0x98] sm:$0xff] }
 0x325   :  { %v357_v16 = vmul.f32 %v677_v9, %v356_v13  ;;  %582 = vmatpush.msra.mxu0 %v461_v58 }
 0x326   :  { %v351_v17 = vadd.f32 1e-05, %v349_v15 }
 0x327   :  { %v361_v19 = vsel %vm360_vm5, %v677_v9, %v357_v16  ;;  %583 = vmatpush.msra.mxu0 %v460_v60 }
 0x328   :  { %v372_v20 = vmul.f32 %v361_v19, %v338_v61  ;;  %678 = vrsqrt.f32 %v351_v17  ;;  %vm368_vm0 = vweird.f32 %v351_v17  ;;  %v443_v61 = vld [vmem:[#allocation2 + $0x8] sm:$0xff] }
 0x329   :  { %561 = vmatpush.msra.mxu3 %v443_v61  ;;  %584 = vmatpush.msra.mxu0 %v459_v62 }
 0x32a   :  { %v378_v22 = vmul.f32 %v645_v18, %v372_v20 }
 0x32b   :  { %562 = vmatpush.msra.mxu3 %v442_v63  ;;  %585 = vmatpush.msra.mxu0 %v458_v1 }
 0x32c   :  { %v989_v23 = vadd.f32 %v646_v21, %v378_v22 }
 0x32e   :  { %v679_v24 = vpop.eup %678  ;;  %400 = vrot.lane.b32.xlu2 %v989_v23, %s749_s24  ;;  %394 = vrot.lane.b32.xlu0 %v989_v23, %s746_s22 }
 0x32f   :  { %v363_v0 = vmul.f32 %v679_v24, %v351_v17  ;;  %388 = vrot.lane.b32.xlu1 %v989_v23, %s747_s2  ;;  %vm369_vm6 = vweird.f32 %v679_v24 }
 0x330   :  { %vm370_vm7 = vmor %vm368_vm0, %vm369_vm6 }
 0x331   :  { %v364_v25 = vmul.f32 %v679_v24, %v363_v0 }
 0x333   :  { %v365_v26 = vmul.f32 0.5, %v364_v25 }
 0x335   :  { %v366_v27 = vsub.f32 1.5, %v365_v26 }
 0x337   :  { %v367_v28 = vmul.f32 %v679_v24, %v366_v27 }
 0x339   :  { %v371_v29 = vsel %vm370_vm7, %v679_v24, %v367_v28 }
 0x33a   :  { %v373_v30 = vmul.f32 %v371_v29, %v339_v4 }
 0x33c   :  { %v379_v31 = vmul.f32 %v645_v18, %v373_v30 }
 0x33e   :  { %v997_v32 = vadd.f32 %v646_v21, %v379_v31 }
 0x340   :  { %402 = vrot.lane.b32.xlu2 %v997_v32, %s749_s24  ;;  %390 = vrot.lane.b32.xlu0 %v997_v32, %s747_s2  ;;  %s752_s2 = smov [#allocation5]  }
 0x341   :  { %396 = vrot.lane.b32.xlu1 %v997_v32, %s746_s22  ;;  %s605_s24 = sshll.u32 %s752_s2, 4  ;;  %s606_s24 = int_to_ptr.vmem [resolvable:$true] %s605_s24 }
 0x388   :  { %v401_v8 = vpop.permute.xlu2 %400 }
 0x39a   :  { %v403_v24 = vpop.permute.xlu2 %402 }
 0x3a0   :  { %v395_v4 = vpop.permute.xlu0 %394 }
 0x3a1   :  { %v389_v48 = vpop.permute.xlu1 %388 }
 0x3a2   :  { %v406_v7 = vsel %vm173_vm12, %v989_v23, %v389_v48 }
 0x3a3   :  { %v408_v9 = vsel %vm179_vm14, %v406_v7, %v395_v4 }
 0x3a4   :  { %v410_v10 = vsel %vm185_vm4, %v408_v9, %v401_v8 }
 0x3a5   :  { %v418_v11 = vsub.f32 %v410_v10, %v414_v5  ;;  %v419_v12 = vsub.f32 %v410_v10, %v415_v6 }
 0x3a7   :  { %v422_v13 = vmul.f32 1.75, %v418_v11  ;;  %v423_v14 = vmul.f32 1.75, %v419_v12 }
 0x3a9   :  { %v426_v15 = vmul.f32 %v422_v13, %v422_v13  ;;  %v427_v16 = vmul.f32 %v423_v14, %v423_v14 }
 0x3ab   :  { %v430_v17 = vsub.f32 0.0, %v426_v15  ;;  %v431_v18 = vsub.f32 0.0, %v427_v16 }
 0x3ad   :  { %v434_v19 = vmul.f32 1.442695, %v430_v17  ;;  %v436_v20 = vmul.f32 1.442695, %v431_v18 }
 0x3af   :  { %680 = vpow2.f32 %v434_v19 }
 0x3b0   :  { %682 = vpow2.f32 %v436_v20 }
 0x3b2   :  { %v391_v21 = vpop.permute.xlu0 %390 }
 0x3b3   :  { %v407_v22 = vsel %vm173_vm12, %v997_v32, %v391_v21  ;;  %v397_v23 = vpop.permute.xlu1 %396 }
 0x3b4   :  { %v409_v0 = vsel %vm179_vm14, %v407_v22, %v397_v23 }
 0x3b5   :  { %v681_v25 = vpop.eup %680  ;;  %v411_v26 = vsel %vm185_vm4, %v409_v0, %v403_v24 }
 0x3b6   :  { %v683_v27 = vpop.eup %682  ;;  %v420_v28 = vsub.f32 %v411_v26, %v414_v5  ;;  %v421_v29 = vsub.f32 %v411_v26, %v415_v6  ;;  %563 = vmatmul.f32.vlgmr.msra.gmra.mxu3 %v681_v25 }
 0x3b7   :  { %586 = vmatmul.f32.vlgmr.msra.gmra.mxu0 %v683_v27 }
 0x3b8   :  { %v424_v30 = vmul.f32 1.75, %v420_v28  ;;  %v425_v31 = vmul.f32 1.75, %v421_v29 }
 0x3ba   :  { %v428_v33 = vmul.f32 %v424_v30, %v424_v30  ;;  %v429_v34 = vmul.f32 %v425_v31, %v425_v31 }
 0x3bc   :  { %v432_v35 = vsub.f32 0.0, %v428_v33  ;;  %v433_v36 = vsub.f32 0.0, %v429_v34 }
 0x3be   :  { %v438_v37 = vmul.f32 1.442695, %v432_v35  ;;  %v440_v32 = vmul.f32 1.442695, %v433_v36 }
 0x3c0   :  { %684 = vpow2.f32 %v438_v37 }
 0x3c1   :  { %686 = vpow2.f32 %v440_v32 }
 0x3c6   :  { %v685_v38 = vpop.eup %684 }
 0x3c7   :  { %v687_v39 = vpop.eup %686  ;;  %566 = vmatmul.f32.gmra.mxu3 %v685_v38 }
 0x3c8   :  { %589 = vmatmul.f32.gmra.mxu0 %v687_v39 }
 0x434   :  { %v587_v44 = vpop.f32.mrf.mxu0 }
 0x439   :  { %v564_v41 = vpop.f32.mrf.mxu3 }
 0x43a   :  { %v565_v42 = vadd.f32 %v564_v41, %v541_v40 }
 0x43c   :  { %v588_v45 = vadd.f32 %v587_v44, %v565_v42 }
 0x43e   :  { %v597_v46 = vadd.f32 %v647_v43, %v588_v45 }
 0x440   :  { %599 = vst [vmem:[#allocation5] sm:$0xff] %v597_v46 }
 0x445   :  { %v590_v51 = vpop.f32.mrf.mxu0 }
 0x44a   :  { %v567_v49 = vpop.f32.mrf.mxu3 }
 0x44b   :  { %v568_v50 = vadd.f32 %v567_v49, %v544_v47 }
 0x44d   :  { %v591_v52 = vadd.f32 %v590_v51, %v568_v50 }
 0x44f   :  { %v598_v53 = vadd.f32 %v647_v43, %v591_v52 }
 0x451   :  { %600 = vst [vmem:[#allocation5 + $0x8] sm:$0xff] %v598_v53 }
 0x452   :  { %613 = dma.vmem_to_hbm [thread:$0]  %s606_s24, 256, %s608_s27, [#allocation4], %s741_s30, %s741_s30, %s742_s14  }
 0x453   :  { %738 = dma.done.wait [#allocation4], 256  }
 0x454   :  { %739 = vsyncadd [#allocation4], 4294967040 }
 0x455   :  { %618 = vsyncpa [#allocation3], 1 }
 0x456   :  { %619 = vsyncpa [#allocation4], 1 }

</bundles_post_ra>
